<compile_context>
chip_gen: v5e
topology: v5e:2x2
jax: 0.10.0
libtpu: 0.0.40
codegen_flags: <defaults>
</compile_context>

<pallas_src>
import jax
import jax.numpy as jnp
import numpy as np
from jax.experimental import pallas as pl
from jax.experimental.pallas import tpu as pltpu


_SQRT_2_OVER_PI = 0.7978845608028654


def _gelu(x):
    # tanh-approximate GELU: the tanh goes to the EUP (separate bundle slot),
    # leaving only a handful of VPU mul/adds per element.
    return 0.5 * x * (1.0 + jnp.tanh(_SQRT_2_OVER_PI * (x + 0.044715 * (x * x * x))))


# ------------------------------ Pallas kernel ------------------------------

def convlayer_kernel(x_ref, w1_ref, b1_ref, w2_ref, b2_ref, w3_ref, b3_ref,
                     p_ref, o_ref):
    """All `depth` MBConv blocks fused; activations are channels-major (C, N)."""
    depth = w1_ref.shape[0]
    x = x_ref[...].astype(jnp.float32)                      # (C, N), lane-dense N

    for blk in range(depth):                                # static unroll (depth small)
        w1 = w1_ref[blk]                                    # (Ch, C)
        b1 = b1_ref[blk]                                    # (Ch, 1)
        w2 = w2_ref[blk]                                    # (Ch, 9)   tap-major
        b2 = b2_ref[blk]                                    # (Ch, 1)
        w3 = w3_ref[blk]                                    # (C, Ch)
        b3 = b3_ref[blk]                                    # (C, 1)

        # conv1: 1x1 pointwise C -> Ch on the MXU (N = B*H*W on the lane axis).
        h = _gelu(jnp.dot(w1, x, preferred_element_type=jnp.float32) + b1)  # (Ch, N)

        # conv2: 3x3 depthwise, stride 1, zero pad 1.  Tap t is a 0/1
        # shift-and-mask matrix (zero padding encoded exactly, no concatenate,
        # no misaligned slice): MXU applies the spatial shift, VPU applies the
        # per-channel tap weight.
        acc = w2[:, 0:1] * jnp.dot(h, p_ref[0], preferred_element_type=jnp.float32)
        for t in range(1, 9):
            acc = acc + w2[:, t:t + 1] * jnp.dot(
                h, p_ref[t], preferred_element_type=jnp.float32)
        h = _gelu(acc + b2)                                                  # (Ch, N)

        # conv3: 1x1 pointwise Ch -> C, residual (drop_path == identity), GELU.
        y = jnp.dot(w3, h, preferred_element_type=jnp.float32) + b3         # (C, N)
        x = _gelu(y + x)

    o_ref[...] = x.astype(o_ref.dtype)


# ------------------------------ host-side helpers ------------------------------

def _shift_matrices(B, H, W):
    """(9, N, N) 0/1 matrices, N = B*H*W.  For tap t = di*3 + dj,
    (h @ P[t])[:, n] = h[:, src(n)] where src is the (h+di-1, w+dj-1) neighbor
    of pixel n, and 0 where the 3x3 window runs off the zero-padded border."""
    N = B * H * W
    mats = np.zeros((9, N, N), np.float32)
    b, h, w = np.meshgrid(np.arange(B), np.arange(H), np.arange(W), indexing="ij")
    n = (b * H + h) * W + w
    for di in range(3):
        for dj in range(3):
            hs, ws = h + di - 1, w + dj - 1
            valid = (hs >= 0) & (hs < H) & (ws >= 0) & (ws < W)
            m = (b * H + np.clip(hs, 0, H - 1)) * W + np.clip(ws, 0, W - 1)
            t = di * 3 + dj
            mats[t, m[valid], n[valid]] = 1.0
    return jnp.asarray(mats)


def conv_layer(x_nchw, blocks_params):
    """ConvLayer.forward (downsample=None): NCHW in, NCHW out."""
    B, C, H, W = x_nchw.shape
    depth = len(blocks_params)
    Ch = blocks_params[0][0].shape[0]
    N = B * H * W

    # Stack per-block folded weights; biases shaped to broadcast over lanes.
    W1 = jnp.stack([p[0] for p in blocks_params])                   # (depth, Ch, C)
    B1 = jnp.stack([p[1].reshape(Ch, 1) for p in blocks_params])    # (depth, Ch, 1)
    W2 = jnp.stack([p[2].reshape(Ch, 9) for p in blocks_params])    # (depth, Ch, 9)
    B2 = jnp.stack([p[3].reshape(Ch, 1) for p in blocks_params])    # (depth, Ch, 1)
    W3 = jnp.stack([p[4] for p in blocks_params])                   # (depth, C, Ch)
    B3 = jnp.stack([p[5].reshape(C, 1) for p in blocks_params])     # (depth, C, 1)
    P = _shift_matrices(B, H, W)                                    # (9, N, N)

    # Lane-dense channels-major layout: (C, B*H*W).  Layout plumbing stays in
    # the wrapper; the kernel sees dense 128-wide lane tiles.
    x_cn = jnp.transpose(x_nchw, (1, 0, 2, 3)).reshape(C, N)

    def full(shape):
        return pl.BlockSpec(shape, lambda *_: (0,) * len(shape))

    out_cn = pl.pallas_call(
        convlayer_kernel,
        out_shape=jax.ShapeDtypeStruct((C, N), x_cn.dtype),
        grid=(1,),                      # whole problem is VMEM-resident; one step
        in_specs=[
            full((C, N)),
            full((depth, Ch, C)), full((depth, Ch, 1)),
            full((depth, Ch, 9)), full((depth, Ch, 1)),
            full((depth, C, Ch)), full((depth, C, 1)),
            full((9, N, N)),
        ],
        out_specs=full((C, N)),
        compiler_params=pltpu.CompilerParams(dimension_semantics=("arbitrary",)),
    )(x_cn, W1, B1, W2, B2, W3, B3, P)

    return jnp.transpose(out_cn.reshape(C, B, H, W), (1, 0, 2, 3))


# --------------------------- parameter construction ---------------------------

def init_params(key, dim, depth, expand_ratio=4.0):
    """Deterministic synthetic params (BN already folded into conv weight+bias)."""
    Ch = int(dim * expand_ratio)
    blocks = []
    for i in range(depth):
        ks = jax.random.split(jax.random.fold_in(key, i), 6)
        w1 = jax.random.normal(ks[0], (Ch, dim), jnp.float32) / np.sqrt(dim)
        b1 = jax.random.normal(ks[1], (Ch,), jnp.float32) * 0.02
        w2 = jax.random.normal(ks[2], (Ch, 3, 3), jnp.float32) / 3.0
        b2 = jax.random.normal(ks[3], (Ch,), jnp.float32) * 0.02
        w3 = jax.random.normal(ks[4], (dim, Ch), jnp.float32) * (0.1 / np.sqrt(Ch))
        b3 = jax.random.normal(ks[5], (dim,), jnp.float32) * 0.02
        blocks.append((w1, b1, w2, b2, w3, b3))
    return blocks


# ------------------------------ pure-JAX reference ------------------------------

def mbconv_ref(x, params):
    """MBConv in NCHW (mirrors the PyTorch module, eval mode, BN folded)."""
    w1, b1, w2, b2, w3, b3 = params
    gelu = lambda v: jax.nn.gelu(v, approximate=True)   # same tanh form as kernel
    hi = jax.lax.Precision.HIGHEST
    h = gelu(jnp.einsum('dc,bchw->bdhw', w1, x, precision=hi)
             + b1[None, :, None, None])
    H, W = x.shape[2], x.shape[3]
    hpad = jnp.pad(h, ((0, 0), (0, 0), (1, 1), (1, 1)))
    acc = jnp.zeros_like(h)
    for di in range(3):
        for dj in range(3):
            acc = acc + (w2[:, di, dj][None, :, None, None]
                         * hpad[:, :, di:di + H, dj:dj + W])
    h2 = gelu(acc + b2[None, :, None, None])
    y = (jnp.einsum('cd,bdhw->bchw', w3, h2, precision=hi)
         + b3[None, :, None, None])
    return gelu(y + x)


def conv_layer_ref(x, blocks_params):
    for params in blocks_params:
        x = mbconv_ref(x, params)
    return x


# ------------------------------------ main ------------------------------------

if __name__ == "__main__":
    # dim=8, input_resolution=8, depth=2, conv_expand_ratio=4.0, batch=2
    # => B*H*W = 128: exactly one dense 128-lane row per channel.
    B, C, H, W = 2, 8, 8, 8
    depth = 2

    key = jax.random.PRNGKey(0)
    kx, kp = jax.random.split(key)
    x = jax.random.normal(kx, (B, C, H, W), jnp.float32)     # NCHW (torch layout)
    params = init_params(kp, dim=C, depth=depth, expand_ratio=4.0)

    out = jax.block_until_ready(conv_layer(x, params))
    ref = jax.block_until_ready(conv_layer_ref(x, params))
    np.testing.assert_allclose(np.asarray(out), np.asarray(ref), rtol=1e-4, atol=1e-4)

    print("KERNEL_OK")
</pallas_src>

<mosaic_0001>
module attributes {stable_mosaic.version = 11 : i64} {
  func.func @convlayer_kernel(%arg0: i32, %arg1: memref<8x128xf32, #tpu.memory_space<vmem>>, %arg2: memref<2x32x8xf32, #tpu.memory_space<vmem>>, %arg3: memref<2x32x1xf32, #tpu.memory_space<vmem>>, %arg4: memref<2x32x9xf32, #tpu.memory_space<vmem>>, %arg5: memref<2x32x1xf32, #tpu.memory_space<vmem>>, %arg6: memref<2x8x32xf32, #tpu.memory_space<vmem>>, %arg7: memref<2x8x1xf32, #tpu.memory_space<vmem>>, %arg8: memref<9x128x128xf32, #tpu.memory_space<vmem>>, %arg9: memref<8x128xf32, #tpu.memory_space<vmem>>) attributes {dimension_semantics = [#tpu.dimension_semantics<arbitrary>], iteration_bounds = array<i64: 1>, scalar_prefetch = 0 : i64, scratch_operands = 0 : i64, tpu.core_type = #tpu.core_type<tc>, window_params = [{pipeline_mode = #tpu.pipeline_mode<synchronous>, transform_indices = @transform_0, window_bounds = array<i64: 8, 128>}, {pipeline_mode = #tpu.pipeline_mode<synchronous>, transform_indices = @transform_1, window_bounds = array<i64: 2, 32, 8>}, {pipeline_mode = #tpu.pipeline_mode<synchronous>, transform_indices = @transform_2, window_bounds = array<i64: 2, 32, 1>}, {pipeline_mode = #tpu.pipeline_mode<synchronous>, transform_indices = @transform_3, window_bounds = array<i64: 2, 32, 9>}, {pipeline_mode = #tpu.pipeline_mode<synchronous>, transform_indices = @transform_4, window_bounds = array<i64: 2, 32, 1>}, {pipeline_mode = #tpu.pipeline_mode<synchronous>, transform_indices = @transform_5, window_bounds = array<i64: 2, 8, 32>}, {pipeline_mode = #tpu.pipeline_mode<synchronous>, transform_indices = @transform_6, window_bounds = array<i64: 2, 8, 1>}, {pipeline_mode = #tpu.pipeline_mode<synchronous>, transform_indices = @transform_7, window_bounds = array<i64: 9, 128, 128>}, {pipeline_mode = #tpu.pipeline_mode<synchronous>, transform_indices = @transform_8, window_bounds = array<i64: 8, 128>}]} {
    %c0 = arith.constant 0 : index
    %c0_0 = arith.constant 0 : index
    %0 = vector.load %arg1[%c0, %c0_0] : memref<8x128xf32, #tpu.memory_space<vmem>>, vector<8x128xf32>
    %c0_1 = arith.constant 0 : index
    %c0_2 = arith.constant 0 : index
    %c0_3 = arith.constant 0 : index
    %1 = vector.load %arg2[%c0_1, %c0_2, %c0_3] : memref<2x32x8xf32, #tpu.memory_space<vmem>>, vector<1x32x8xf32>
    %2 = vector.shape_cast %1 : vector<1x32x8xf32> to vector<32x8xf32>
    %c0_4 = arith.constant 0 : index
    %c0_5 = arith.constant 0 : index
    %c0_6 = arith.constant 0 : index
    %3 = vector.load %arg3[%c0_4, %c0_5, %c0_6] : memref<2x32x1xf32, #tpu.memory_space<vmem>>, vector<1x32x1xf32>
    %4 = vector.shape_cast %3 : vector<1x32x1xf32> to vector<32x1xf32>
    %c0_7 = arith.constant 0 : index
    %c0_8 = arith.constant 0 : index
    %c0_9 = arith.constant 0 : index
    %5 = vector.load %arg4[%c0_7, %c0_8, %c0_9] : memref<2x32x9xf32, #tpu.memory_space<vmem>>, vector<1x32x9xf32>
    %6 = vector.shape_cast %5 : vector<1x32x9xf32> to vector<32x9xf32>
    %c0_10 = arith.constant 0 : index
    %c0_11 = arith.constant 0 : index
    %c0_12 = arith.constant 0 : index
    %7 = vector.load %arg5[%c0_10, %c0_11, %c0_12] : memref<2x32x1xf32, #tpu.memory_space<vmem>>, vector<1x32x1xf32>
    %8 = vector.shape_cast %7 : vector<1x32x1xf32> to vector<32x1xf32>
    %c0_13 = arith.constant 0 : index
    %c0_14 = arith.constant 0 : index
    %c0_15 = arith.constant 0 : index
    %9 = vector.load %arg6[%c0_13, %c0_14, %c0_15] : memref<2x8x32xf32, #tpu.memory_space<vmem>>, vector<1x8x32xf32>
    %10 = vector.shape_cast %9 : vector<1x8x32xf32> to vector<8x32xf32>
    %c0_16 = arith.constant 0 : index
    %c0_17 = arith.constant 0 : index
    %c0_18 = arith.constant 0 : index
    %11 = vector.load %arg7[%c0_16, %c0_17, %c0_18] : memref<2x8x1xf32, #tpu.memory_space<vmem>>, vector<1x8x1xf32>
    %12 = vector.shape_cast %11 : vector<1x8x1xf32> to vector<8x1xf32>
    %cst = arith.constant dense<0.000000e+00> : vector<32x128xf32>
    %13 = tpu.matmul %2, %0, %cst {dimension_numbers = #tpu.dot_dimension_numbers<[1], [0], [0], [1], [0, 0, 1, 1], [], []>} : vector<32x8xf32>, vector<8x128xf32>, vector<32x128xf32> -> vector<32x128xf32>
    %14 = vector.broadcast %4 : vector<32x1xf32> to vector<32x128xf32>
    %15 = arith.addf %13, %14 : vector<32x128xf32>
    %cst_19 = arith.constant 5.000000e-01 : f32
    %16 = vector.broadcast %cst_19 : f32 to vector<32x128xf32>
    %17 = arith.mulf %16, %15 : vector<32x128xf32>
    %18 = arith.mulf %15, %15 : vector<32x128xf32>
    %19 = arith.mulf %18, %15 : vector<32x128xf32>
    %cst_20 = arith.constant 4.471500e-02 : f32
    %20 = vector.broadcast %cst_20 : f32 to vector<32x128xf32>
    %21 = arith.mulf %20, %19 : vector<32x128xf32>
    %22 = arith.addf %15, %21 : vector<32x128xf32>
    %cst_21 = arith.constant 0.797884583 : f32
    %23 = vector.broadcast %cst_21 : f32 to vector<32x128xf32>
    %24 = arith.mulf %23, %22 : vector<32x128xf32>
    %25 = math.tanh %24 : vector<32x128xf32>
    %cst_22 = arith.constant 1.000000e+00 : f32
    %26 = vector.broadcast %cst_22 : f32 to vector<32x128xf32>
    %27 = arith.addf %26, %25 : vector<32x128xf32>
    %28 = arith.mulf %17, %27 : vector<32x128xf32>
    %29 = vector.extract_strided_slice %6 {offsets = [0, 0], sizes = [32, 1], strides = [1, 1]} : vector<32x9xf32> to vector<32x1xf32>
    %c0_23 = arith.constant 0 : index
    %c0_24 = arith.constant 0 : index
    %c0_25 = arith.constant 0 : index
    %30 = vector.load %arg8[%c0_23, %c0_24, %c0_25] : memref<9x128x128xf32, #tpu.memory_space<vmem>>, vector<1x128x128xf32>
    %31 = vector.shape_cast %30 : vector<1x128x128xf32> to vector<128x128xf32>
    %cst_26 = arith.constant dense<0.000000e+00> : vector<32x128xf32>
    %32 = tpu.matmul %28, %31, %cst_26 {dimension_numbers = #tpu.dot_dimension_numbers<[1], [0], [0], [1], [0, 0, 1, 1], [], []>} : vector<32x128xf32>, vector<128x128xf32>, vector<32x128xf32> -> vector<32x128xf32>
    %33 = vector.broadcast %29 : vector<32x1xf32> to vector<32x128xf32>
    %34 = arith.mulf %33, %32 : vector<32x128xf32>
    %35 = vector.extract_strided_slice %6 {offsets = [0, 1], sizes = [32, 1], strides = [1, 1]} : vector<32x9xf32> to vector<32x1xf32>
    %c1 = arith.constant 1 : index
    %c0_27 = arith.constant 0 : index
    %c0_28 = arith.constant 0 : index
    %36 = vector.load %arg8[%c1, %c0_27, %c0_28] : memref<9x128x128xf32, #tpu.memory_space<vmem>>, vector<1x128x128xf32>
    %37 = vector.shape_cast %36 : vector<1x128x128xf32> to vector<128x128xf32>
    %cst_29 = arith.constant dense<0.000000e+00> : vector<32x128xf32>
    %38 = tpu.matmul %28, %37, %cst_29 {dimension_numbers = #tpu.dot_dimension_numbers<[1], [0], [0], [1], [0, 0, 1, 1], [], []>} : vector<32x128xf32>, vector<128x128xf32>, vector<32x128xf32> -> vector<32x128xf32>
    %39 = vector.broadcast %35 : vector<32x1xf32> to vector<32x128xf32>
    %40 = arith.mulf %39, %38 : vector<32x128xf32>
    %41 = arith.addf %34, %40 : vector<32x128xf32>
    %42 = vector.extract_strided_slice %6 {offsets = [0, 2], sizes = [32, 1], strides = [1, 1]} : vector<32x9xf32> to vector<32x1xf32>
    %c2 = arith.constant 2 : index
    %c0_30 = arith.constant 0 : index
    %c0_31 = arith.constant 0 : index
    %43 = vector.load %arg8[%c2, %c0_30, %c0_31] : memref<9x128x128xf32, #tpu.memory_space<vmem>>, vector<1x128x128xf32>
    %44 = vector.shape_cast %43 : vector<1x128x128xf32> to vector<128x128xf32>
    %cst_32 = arith.constant dense<0.000000e+00> : vector<32x128xf32>
    %45 = tpu.matmul %28, %44, %cst_32 {dimension_numbers = #tpu.dot_dimension_numbers<[1], [0], [0], [1], [0, 0, 1, 1], [], []>} : vector<32x128xf32>, vector<128x128xf32>, vector<32x128xf32> -> vector<32x128xf32>
    %46 = vector.broadcast %42 : vector<32x1xf32> to vector<32x128xf32>
    %47 = arith.mulf %46, %45 : vector<32x128xf32>
    %48 = arith.addf %41, %47 : vector<32x128xf32>
    %49 = vector.extract_strided_slice %6 {offsets = [0, 3], sizes = [32, 1], strides = [1, 1]} : vector<32x9xf32> to vector<32x1xf32>
    %c3 = arith.constant 3 : index
    %c0_33 = arith.constant 0 : index
    %c0_34 = arith.constant 0 : index
    %50 = vector.load %arg8[%c3, %c0_33, %c0_34] : memref<9x128x128xf32, #tpu.memory_space<vmem>>, vector<1x128x128xf32>
    %51 = vector.shape_cast %50 : vector<1x128x128xf32> to vector<128x128xf32>
    %cst_35 = arith.constant dense<0.000000e+00> : vector<32x128xf32>
    %52 = tpu.matmul %28, %51, %cst_35 {dimension_numbers = #tpu.dot_dimension_numbers<[1], [0], [0], [1], [0, 0, 1, 1], [], []>} : vector<32x128xf32>, vector<128x128xf32>, vector<32x128xf32> -> vector<32x128xf32>
    %53 = vector.broadcast %49 : vector<32x1xf32> to vector<32x128xf32>
    %54 = arith.mulf %53, %52 : vector<32x128xf32>
    %55 = arith.addf %48, %54 : vector<32x128xf32>
    %56 = vector.extract_strided_slice %6 {offsets = [0, 4], sizes = [32, 1], strides = [1, 1]} : vector<32x9xf32> to vector<32x1xf32>
    %c4 = arith.constant 4 : index
    %c0_36 = arith.constant 0 : index
    %c0_37 = arith.constant 0 : index
    %57 = vector.load %arg8[%c4, %c0_36, %c0_37] : memref<9x128x128xf32, #tpu.memory_space<vmem>>, vector<1x128x128xf32>
    %58 = vector.shape_cast %57 : vector<1x128x128xf32> to vector<128x128xf32>
    %cst_38 = arith.constant dense<0.000000e+00> : vector<32x128xf32>
    %59 = tpu.matmul %28, %58, %cst_38 {dimension_numbers = #tpu.dot_dimension_numbers<[1], [0], [0], [1], [0, 0, 1, 1], [], []>} : vector<32x128xf32>, vector<128x128xf32>, vector<32x128xf32> -> vector<32x128xf32>
    %60 = vector.broadcast %56 : vector<32x1xf32> to vector<32x128xf32>
    %61 = arith.mulf %60, %59 : vector<32x128xf32>
    %62 = arith.addf %55, %61 : vector<32x128xf32>
    %63 = vector.extract_strided_slice %6 {offsets = [0, 5], sizes = [32, 1], strides = [1, 1]} : vector<32x9xf32> to vector<32x1xf32>
    %c5 = arith.constant 5 : index
    %c0_39 = arith.constant 0 : index
    %c0_40 = arith.constant 0 : index
    %64 = vector.load %arg8[%c5, %c0_39, %c0_40] : memref<9x128x128xf32, #tpu.memory_space<vmem>>, vector<1x128x128xf32>
    %65 = vector.shape_cast %64 : vector<1x128x128xf32> to vector<128x128xf32>
    %cst_41 = arith.constant dense<0.000000e+00> : vector<32x128xf32>
    %66 = tpu.matmul %28, %65, %cst_41 {dimension_numbers = #tpu.dot_dimension_numbers<[1], [0], [0], [1], [0, 0, 1, 1], [], []>} : vector<32x128xf32>, vector<128x128xf32>, vector<32x128xf32> -> vector<32x128xf32>
    %67 = vector.broadcast %63 : vector<32x1xf32> to vector<32x128xf32>
    %68 = arith.mulf %67, %66 : vector<32x128xf32>
    %69 = arith.addf %62, %68 : vector<32x128xf32>
    %70 = vector.extract_strided_slice %6 {offsets = [0, 6], sizes = [32, 1], strides = [1, 1]} : vector<32x9xf32> to vector<32x1xf32>
    %c6 = arith.constant 6 : index
    %c0_42 = arith.constant 0 : index
    %c0_43 = arith.constant 0 : index
    %71 = vector.load %arg8[%c6, %c0_42, %c0_43] : memref<9x128x128xf32, #tpu.memory_space<vmem>>, vector<1x128x128xf32>
    %72 = vector.shape_cast %71 : vector<1x128x128xf32> to vector<128x128xf32>
    %cst_44 = arith.constant dense<0.000000e+00> : vector<32x128xf32>
    %73 = tpu.matmul %28, %72, %cst_44 {dimension_numbers = #tpu.dot_dimension_numbers<[1], [0], [0], [1], [0, 0, 1, 1], [], []>} : vector<32x128xf32>, vector<128x128xf32>, vector<32x128xf32> -> vector<32x128xf32>
    %74 = vector.broadcast %70 : vector<32x1xf32> to vector<32x128xf32>
    %75 = arith.mulf %74, %73 : vector<32x128xf32>
    %76 = arith.addf %69, %75 : vector<32x128xf32>
    %77 = vector.extract_strided_slice %6 {offsets = [0, 7], sizes = [32, 1], strides = [1, 1]} : vector<32x9xf32> to vector<32x1xf32>
    %c7 = arith.constant 7 : index
    %c0_45 = arith.constant 0 : index
    %c0_46 = arith.constant 0 : index
    %78 = vector.load %arg8[%c7, %c0_45, %c0_46] : memref<9x128x128xf32, #tpu.memory_space<vmem>>, vector<1x128x128xf32>
    %79 = vector.shape_cast %78 : vector<1x128x128xf32> to vector<128x128xf32>
    %cst_47 = arith.constant dense<0.000000e+00> : vector<32x128xf32>
    %80 = tpu.matmul %28, %79, %cst_47 {dimension_numbers = #tpu.dot_dimension_numbers<[1], [0], [0], [1], [0, 0, 1, 1], [], []>} : vector<32x128xf32>, vector<128x128xf32>, vector<32x128xf32> -> vector<32x128xf32>
    %81 = vector.broadcast %77 : vector<32x1xf32> to vector<32x128xf32>
    %82 = arith.mulf %81, %80 : vector<32x128xf32>
    %83 = arith.addf %76, %82 : vector<32x128xf32>
    %84 = vector.extract_strided_slice %6 {offsets = [0, 8], sizes = [32, 1], strides = [1, 1]} : vector<32x9xf32> to vector<32x1xf32>
    %c8 = arith.constant 8 : index
    %c0_48 = arith.constant 0 : index
    %c0_49 = arith.constant 0 : index
    %85 = vector.load %arg8[%c8, %c0_48, %c0_49] : memref<9x128x128xf32, #tpu.memory_space<vmem>>, vector<1x128x128xf32>
    %86 = vector.shape_cast %85 : vector<1x128x128xf32> to vector<128x128xf32>
    %cst_50 = arith.constant dense<0.000000e+00> : vector<32x128xf32>
    %87 = tpu.matmul %28, %86, %cst_50 {dimension_numbers = #tpu.dot_dimension_numbers<[1], [0], [0], [1], [0, 0, 1, 1], [], []>} : vector<32x128xf32>, vector<128x128xf32>, vector<32x128xf32> -> vector<32x128xf32>
    %88 = vector.broadcast %84 : vector<32x1xf32> to vector<32x128xf32>
    %89 = arith.mulf %88, %87 : vector<32x128xf32>
    %90 = arith.addf %83, %89 : vector<32x128xf32>
    %91 = vector.broadcast %8 : vector<32x1xf32> to vector<32x128xf32>
    %92 = arith.addf %90, %91 : vector<32x128xf32>
    %cst_51 = arith.constant 5.000000e-01 : f32
    %93 = vector.broadcast %cst_51 : f32 to vector<32x128xf32>
    %94 = arith.mulf %93, %92 : vector<32x128xf32>
    %95 = arith.mulf %92, %92 : vector<32x128xf32>
    %96 = arith.mulf %95, %92 : vector<32x128xf32>
    %cst_52 = arith.constant 4.471500e-02 : f32
    %97 = vector.broadcast %cst_52 : f32 to vector<32x128xf32>
    %98 = arith.mulf %97, %96 : vector<32x128xf32>
    %99 = arith.addf %92, %98 : vector<32x128xf32>
    %cst_53 = arith.constant 0.797884583 : f32
    %100 = vector.broadcast %cst_53 : f32 to vector<32x128xf32>
    %101 = arith.mulf %100, %99 : vector<32x128xf32>
    %102 = math.tanh %101 : vector<32x128xf32>
    %cst_54 = arith.constant 1.000000e+00 : f32
    %103 = vector.broadcast %cst_54 : f32 to vector<32x128xf32>
    %104 = arith.addf %103, %102 : vector<32x128xf32>
    %105 = arith.mulf %94, %104 : vector<32x128xf32>
    %cst_55 = arith.constant dense<0.000000e+00> : vector<8x128xf32>
    %106 = tpu.matmul %10, %105, %cst_55 {dimension_numbers = #tpu.dot_dimension_numbers<[1], [0], [0], [1], [0, 0, 1, 1], [], []>} : vector<8x32xf32>, vector<32x128xf32>, vector<8x128xf32> -> vector<8x128xf32>
    %107 = vector.broadcast %12 : vector<8x1xf32> to vector<8x128xf32>
    %108 = arith.addf %106, %107 : vector<8x128xf32>
    %109 = arith.addf %108, %0 : vector<8x128xf32>
    %cst_56 = arith.constant 5.000000e-01 : f32
    %110 = vector.broadcast %cst_56 : f32 to vector<8x128xf32>
    %111 = arith.mulf %110, %109 : vector<8x128xf32>
    %112 = arith.mulf %109, %109 : vector<8x128xf32>
    %113 = arith.mulf %112, %109 : vector<8x128xf32>
    %cst_57 = arith.constant 4.471500e-02 : f32
    %114 = vector.broadcast %cst_57 : f32 to vector<8x128xf32>
    %115 = arith.mulf %114, %113 : vector<8x128xf32>
    %116 = arith.addf %109, %115 : vector<8x128xf32>
    %cst_58 = arith.constant 0.797884583 : f32
    %117 = vector.broadcast %cst_58 : f32 to vector<8x128xf32>
    %118 = arith.mulf %117, %116 : vector<8x128xf32>
    %119 = math.tanh %118 : vector<8x128xf32>
    %cst_59 = arith.constant 1.000000e+00 : f32
    %120 = vector.broadcast %cst_59 : f32 to vector<8x128xf32>
    %121 = arith.addf %120, %119 : vector<8x128xf32>
    %122 = arith.mulf %111, %121 : vector<8x128xf32>
    %c1_60 = arith.constant 1 : index
    %c0_61 = arith.constant 0 : index
    %c0_62 = arith.constant 0 : index
    %123 = vector.load %arg2[%c1_60, %c0_61, %c0_62] : memref<2x32x8xf32, #tpu.memory_space<vmem>>, vector<1x32x8xf32>
    %124 = vector.shape_cast %123 : vector<1x32x8xf32> to vector<32x8xf32>
    %c1_63 = arith.constant 1 : index
    %c0_64 = arith.constant 0 : index
    %c0_65 = arith.constant 0 : index
    %125 = vector.load %arg3[%c1_63, %c0_64, %c0_65] : memref<2x32x1xf32, #tpu.memory_space<vmem>>, vector<1x32x1xf32>
    %126 = vector.shape_cast %125 : vector<1x32x1xf32> to vector<32x1xf32>
    %c1_66 = arith.constant 1 : index
    %c0_67 = arith.constant 0 : index
    %c0_68 = arith.constant 0 : index
    %127 = vector.load %arg4[%c1_66, %c0_67, %c0_68] : memref<2x32x9xf32, #tpu.memory_space<vmem>>, vector<1x32x9xf32>
    %128 = vector.shape_cast %127 : vector<1x32x9xf32> to vector<32x9xf32>
    %c1_69 = arith.constant 1 : index
    %c0_70 = arith.constant 0 : index
    %c0_71 = arith.constant 0 : index
    %129 = vector.load %arg5[%c1_69, %c0_70, %c0_71] : memref<2x32x1xf32, #tpu.memory_space<vmem>>, vector<1x32x1xf32>
    %130 = vector.shape_cast %129 : vector<1x32x1xf32> to vector<32x1xf32>
    %c1_72 = arith.constant 1 : index
    %c0_73 = arith.constant 0 : index
    %c0_74 = arith.constant 0 : index
    %131 = vector.load %arg6[%c1_72, %c0_73, %c0_74] : memref<2x8x32xf32, #tpu.memory_space<vmem>>, vector<1x8x32xf32>
    %132 = vector.shape_cast %131 : vector<1x8x32xf32> to vector<8x32xf32>
    %c1_75 = arith.constant 1 : index
    %c0_76 = arith.constant 0 : index
    %c0_77 = arith.constant 0 : index
    %133 = vector.load %arg7[%c1_75, %c0_76, %c0_77] : memref<2x8x1xf32, #tpu.memory_space<vmem>>, vector<1x8x1xf32>
    %134 = vector.shape_cast %133 : vector<1x8x1xf32> to vector<8x1xf32>
    %cst_78 = arith.constant dense<0.000000e+00> : vector<32x128xf32>
    %135 = tpu.matmul %124, %122, %cst_78 {dimension_numbers = #tpu.dot_dimension_numbers<[1], [0], [0], [1], [0, 0, 1, 1], [], []>} : vector<32x8xf32>, vector<8x128xf32>, vector<32x128xf32> -> vector<32x128xf32>
    %136 = vector.broadcast %126 : vector<32x1xf32> to vector<32x128xf32>
    %137 = arith.addf %135, %136 : vector<32x128xf32>
    %cst_79 = arith.constant 5.000000e-01 : f32
    %138 = vector.broadcast %cst_79 : f32 to vector<32x128xf32>
    %139 = arith.mulf %138, %137 : vector<32x128xf32>
    %140 = arith.mulf %137, %137 : vector<32x128xf32>
    %141 = arith.mulf %140, %137 : vector<32x128xf32>
    %cst_80 = arith.constant 4.471500e-02 : f32
    %142 = vector.broadcast %cst_80 : f32 to vector<32x128xf32>
    %143 = arith.mulf %142, %141 : vector<32x128xf32>
    %144 = arith.addf %137, %143 : vector<32x128xf32>
    %cst_81 = arith.constant 0.797884583 : f32
    %145 = vector.broadcast %cst_81 : f32 to vector<32x128xf32>
    %146 = arith.mulf %145, %144 : vector<32x128xf32>
    %147 = math.tanh %146 : vector<32x128xf32>
    %cst_82 = arith.constant 1.000000e+00 : f32
    %148 = vector.broadcast %cst_82 : f32 to vector<32x128xf32>
    %149 = arith.addf %148, %147 : vector<32x128xf32>
    %150 = arith.mulf %139, %149 : vector<32x128xf32>
    %151 = vector.extract_strided_slice %128 {offsets = [0, 0], sizes = [32, 1], strides = [1, 1]} : vector<32x9xf32> to vector<32x1xf32>
    %c0_83 = arith.constant 0 : index
    %c0_84 = arith.constant 0 : index
    %c0_85 = arith.constant 0 : index
    %152 = vector.load %arg8[%c0_83, %c0_84, %c0_85] : memref<9x128x128xf32, #tpu.memory_space<vmem>>, vector<1x128x128xf32>
    %153 = vector.shape_cast %152 : vector<1x128x128xf32> to vector<128x128xf32>
    %cst_86 = arith.constant dense<0.000000e+00> : vector<32x128xf32>
    %154 = tpu.matmul %150, %153, %cst_86 {dimension_numbers = #tpu.dot_dimension_numbers<[1], [0], [0], [1], [0, 0, 1, 1], [], []>} : vector<32x128xf32>, vector<128x128xf32>, vector<32x128xf32> -> vector<32x128xf32>
    %155 = vector.broadcast %151 : vector<32x1xf32> to vector<32x128xf32>
    %156 = arith.mulf %155, %154 : vector<32x128xf32>
    %157 = vector.extract_strided_slice %128 {offsets = [0, 1], sizes = [32, 1], strides = [1, 1]} : vector<32x9xf32> to vector<32x1xf32>
    %c1_87 = arith.constant 1 : index
    %c0_88 = arith.constant 0 : index
    %c0_89 = arith.constant 0 : index
    %158 = vector.load %arg8[%c1_87, %c0_88, %c0_89] : memref<9x128x128xf32, #tpu.memory_space<vmem>>, vector<1x128x128xf32>
    %159 = vector.shape_cast %158 : vector<1x128x128xf32> to vector<128x128xf32>
    %cst_90 = arith.constant dense<0.000000e+00> : vector<32x128xf32>
    %160 = tpu.matmul %150, %159, %cst_90 {dimension_numbers = #tpu.dot_dimension_numbers<[1], [0], [0], [1], [0, 0, 1, 1], [], []>} : vector<32x128xf32>, vector<128x128xf32>, vector<32x128xf32> -> vector<32x128xf32>
    %161 = vector.broadcast %157 : vector<32x1xf32> to vector<32x128xf32>
    %162 = arith.mulf %161, %160 : vector<32x128xf32>
    %163 = arith.addf %156, %162 : vector<32x128xf32>
    %164 = vector.extract_strided_slice %128 {offsets = [0, 2], sizes = [32, 1], strides = [1, 1]} : vector<32x9xf32> to vector<32x1xf32>
    %c2_91 = arith.constant 2 : index
    %c0_92 = arith.constant 0 : index
    %c0_93 = arith.constant 0 : index
    %165 = vector.load %arg8[%c2_91, %c0_92, %c0_93] : memref<9x128x128xf32, #tpu.memory_space<vmem>>, vector<1x128x128xf32>
    %166 = vector.shape_cast %165 : vector<1x128x128xf32> to vector<128x128xf32>
    %cst_94 = arith.constant dense<0.000000e+00> : vector<32x128xf32>
    %167 = tpu.matmul %150, %166, %cst_94 {dimension_numbers = #tpu.dot_dimension_numbers<[1], [0], [0], [1], [0, 0, 1, 1], [], []>} : vector<32x128xf32>, vector<128x128xf32>, vector<32x128xf32> -> vector<32x128xf32>
    %168 = vector.broadcast %164 : vector<32x1xf32> to vector<32x128xf32>
    %169 = arith.mulf %168, %167 : vector<32x128xf32>
    %170 = arith.addf %163, %169 : vector<32x128xf32>
    %171 = vector.extract_strided_slice %128 {offsets = [0, 3], sizes = [32, 1], strides = [1, 1]} : vector<32x9xf32> to vector<32x1xf32>
    %c3_95 = arith.constant 3 : index
    %c0_96 = arith.constant 0 : index
    %c0_97 = arith.constant 0 : index
    %172 = vector.load %arg8[%c3_95, %c0_96, %c0_97] : memref<9x128x128xf32, #tpu.memory_space<vmem>>, vector<1x128x128xf32>
    %173 = vector.shape_cast %172 : vector<1x128x128xf32> to vector<128x128xf32>
    %cst_98 = arith.constant dense<0.000000e+00> : vector<32x128xf32>
    %174 = tpu.matmul %150, %173, %cst_98 {dimension_numbers = #tpu.dot_dimension_numbers<[1], [0], [0], [1], [0, 0, 1, 1], [], []>} : vector<32x128xf32>, vector<128x128xf32>, vector<32x128xf32> -> vector<32x128xf32>
    %175 = vector.broadcast %171 : vector<32x1xf32> to vector<32x128xf32>
    %176 = arith.mulf %175, %174 : vector<32x128xf32>
    %177 = arith.addf %170, %176 : vector<32x128xf32>
    %178 = vector.extract_strided_slice %128 {offsets = [0, 4], sizes = [32, 1], strides = [1, 1]} : vector<32x9xf32> to vector<32x1xf32>
    %c4_99 = arith.constant 4 : index
    %c0_100 = arith.constant 0 : index
    %c0_101 = arith.constant 0 : index
    %179 = vector.load %arg8[%c4_99, %c0_100, %c0_101] : memref<9x128x128xf32, #tpu.memory_space<vmem>>, vector<1x128x128xf32>
    %180 = vector.shape_cast %179 : vector<1x128x128xf32> to vector<128x128xf32>
    %cst_102 = arith.constant dense<0.000000e+00> : vector<32x128xf32>
    %181 = tpu.matmul %150, %180, %cst_102 {dimension_numbers = #tpu.dot_dimension_numbers<[1], [0], [0], [1], [0, 0, 1, 1], [], []>} : vector<32x128xf32>, vector<128x128xf32>, vector<32x128xf32> -> vector<32x128xf32>
    %182 = vector.broadcast %178 : vector<32x1xf32> to vector<32x128xf32>
    %183 = arith.mulf %182, %181 : vector<32x128xf32>
    %184 = arith.addf %177, %183 : vector<32x128xf32>
    %185 = vector.extract_strided_slice %128 {offsets = [0, 5], sizes = [32, 1], strides = [1, 1]} : vector<32x9xf32> to vector<32x1xf32>
    %c5_103 = arith.constant 5 : index
    %c0_104 = arith.constant 0 : index
    %c0_105 = arith.constant 0 : index
    %186 = vector.load %arg8[%c5_103, %c0_104, %c0_105] : memref<9x128x128xf32, #tpu.memory_space<vmem>>, vector<1x128x128xf32>
    %187 = vector.shape_cast %186 : vector<1x128x128xf32> to vector<128x128xf32>
    %cst_106 = arith.constant dense<0.000000e+00> : vector<32x128xf32>
    %188 = tpu.matmul %150, %187, %cst_106 {dimension_numbers = #tpu.dot_dimension_numbers<[1], [0], [0], [1], [0, 0, 1, 1], [], []>} : vector<32x128xf32>, vector<128x128xf32>, vector<32x128xf32> -> vector<32x128xf32>
    %189 = vector.broadcast %185 : vector<32x1xf32> to vector<32x128xf32>
    %190 = arith.mulf %189, %188 : vector<32x128xf32>
    %191 = arith.addf %184, %190 : vector<32x128xf32>
    %192 = vector.extract_strided_slice %128 {offsets = [0, 6], sizes = [32, 1], strides = [1, 1]} : vector<32x9xf32> to vector<32x1xf32>
    %c6_107 = arith.constant 6 : index
    %c0_108 = arith.constant 0 : index
    %c0_109 = arith.constant 0 : index
    %193 = vector.load %arg8[%c6_107, %c0_108, %c0_109] : memref<9x128x128xf32, #tpu.memory_space<vmem>>, vector<1x128x128xf32>
    %194 = vector.shape_cast %193 : vector<1x128x128xf32> to vector<128x128xf32>
    %cst_110 = arith.constant dense<0.000000e+00> : vector<32x128xf32>
    %195 = tpu.matmul %150, %194, %cst_110 {dimension_numbers = #tpu.dot_dimension_numbers<[1], [0], [0], [1], [0, 0, 1, 1], [], []>} : vector<32x128xf32>, vector<128x128xf32>, vector<32x128xf32> -> vector<32x128xf32>
    %196 = vector.broadcast %192 : vector<32x1xf32> to vector<32x128xf32>
    %197 = arith.mulf %196, %195 : vector<32x128xf32>
    %198 = arith.addf %191, %197 : vector<32x128xf32>
    %199 = vector.extract_strided_slice %128 {offsets = [0, 7], sizes = [32, 1], strides = [1, 1]} : vector<32x9xf32> to vector<32x1xf32>
    %c7_111 = arith.constant 7 : index
    %c0_112 = arith.constant 0 : index
    %c0_113 = arith.constant 0 : index
    %200 = vector.load %arg8[%c7_111, %c0_112, %c0_113] : memref<9x128x128xf32, #tpu.memory_space<vmem>>, vector<1x128x128xf32>
    %201 = vector.shape_cast %200 : vector<1x128x128xf32> to vector<128x128xf32>
    %cst_114 = arith.constant dense<0.000000e+00> : vector<32x128xf32>
    %202 = tpu.matmul %150, %201, %cst_114 {dimension_numbers = #tpu.dot_dimension_numbers<[1], [0], [0], [1], [0, 0, 1, 1], [], []>} : vector<32x128xf32>, vector<128x128xf32>, vector<32x128xf32> -> vector<32x128xf32>
    %203 = vector.broadcast %199 : vector<32x1xf32> to vector<32x128xf32>
    %204 = arith.mulf %203, %202 : vector<32x128xf32>
    %205 = arith.addf %198, %204 : vector<32x128xf32>
    %206 = vector.extract_strided_slice %128 {offsets = [0, 8], sizes = [32, 1], strides = [1, 1]} : vector<32x9xf32> to vector<32x1xf32>
    %c8_115 = arith.constant 8 : index
    %c0_116 = arith.constant 0 : index
    %c0_117 = arith.constant 0 : index
    %207 = vector.load %arg8[%c8_115, %c0_116, %c0_117] : memref<9x128x128xf32, #tpu.memory_space<vmem>>, vector<1x128x128xf32>
    %208 = vector.shape_cast %207 : vector<1x128x128xf32> to vector<128x128xf32>
    %cst_118 = arith.constant dense<0.000000e+00> : vector<32x128xf32>
    %209 = tpu.matmul %150, %208, %cst_118 {dimension_numbers = #tpu.dot_dimension_numbers<[1], [0], [0], [1], [0, 0, 1, 1], [], []>} : vector<32x128xf32>, vector<128x128xf32>, vector<32x128xf32> -> vector<32x128xf32>
    %210 = vector.broadcast %206 : vector<32x1xf32> to vector<32x128xf32>
    %211 = arith.mulf %210, %209 : vector<32x128xf32>
    %212 = arith.addf %205, %211 : vector<32x128xf32>
    %213 = vector.broadcast %130 : vector<32x1xf32> to vector<32x128xf32>
    %214 = arith.addf %212, %213 : vector<32x128xf32>
    %cst_119 = arith.constant 5.000000e-01 : f32
    %215 = vector.broadcast %cst_119 : f32 to vector<32x128xf32>
    %216 = arith.mulf %215, %214 : vector<32x128xf32>
    %217 = arith.mulf %214, %214 : vector<32x128xf32>
    %218 = arith.mulf %217, %214 : vector<32x128xf32>
    %cst_120 = arith.constant 4.471500e-02 : f32
    %219 = vector.broadcast %cst_120 : f32 to vector<32x128xf32>
    %220 = arith.mulf %219, %218 : vector<32x128xf32>
    %221 = arith.addf %214, %220 : vector<32x128xf32>
    %cst_121 = arith.constant 0.797884583 : f32
    %222 = vector.broadcast %cst_121 : f32 to vector<32x128xf32>
    %223 = arith.mulf %222, %221 : vector<32x128xf32>
    %224 = math.tanh %223 : vector<32x128xf32>
    %cst_122 = arith.constant 1.000000e+00 : f32
    %225 = vector.broadcast %cst_122 : f32 to vector<32x128xf32>
    %226 = arith.addf %225, %224 : vector<32x128xf32>
    %227 = arith.mulf %216, %226 : vector<32x128xf32>
    %cst_123 = arith.constant dense<0.000000e+00> : vector<8x128xf32>
    %228 = tpu.matmul %132, %227, %cst_123 {dimension_numbers = #tpu.dot_dimension_numbers<[1], [0], [0], [1], [0, 0, 1, 1], [], []>} : vector<8x32xf32>, vector<32x128xf32>, vector<8x128xf32> -> vector<8x128xf32>
    %229 = vector.broadcast %134 : vector<8x1xf32> to vector<8x128xf32>
    %230 = arith.addf %228, %229 : vector<8x128xf32>
    %231 = arith.addf %230, %122 : vector<8x128xf32>
    %cst_124 = arith.constant 5.000000e-01 : f32
    %232 = vector.broadcast %cst_124 : f32 to vector<8x128xf32>
    %233 = arith.mulf %232, %231 : vector<8x128xf32>
    %234 = arith.mulf %231, %231 : vector<8x128xf32>
    %235 = arith.mulf %234, %231 : vector<8x128xf32>
    %cst_125 = arith.constant 4.471500e-02 : f32
    %236 = vector.broadcast %cst_125 : f32 to vector<8x128xf32>
    %237 = arith.mulf %236, %235 : vector<8x128xf32>
    %238 = arith.addf %231, %237 : vector<8x128xf32>
    %cst_126 = arith.constant 0.797884583 : f32
    %239 = vector.broadcast %cst_126 : f32 to vector<8x128xf32>
    %240 = arith.mulf %239, %238 : vector<8x128xf32>
    %241 = math.tanh %240 : vector<8x128xf32>
    %cst_127 = arith.constant 1.000000e+00 : f32
    %242 = vector.broadcast %cst_127 : f32 to vector<8x128xf32>
    %243 = arith.addf %242, %241 : vector<8x128xf32>
    %244 = arith.mulf %233, %243 : vector<8x128xf32>
    %c0_128 = arith.constant 0 : index
    %c0_129 = arith.constant 0 : index
    %245 = vector.load %arg9[%c0_128, %c0_129] : memref<8x128xf32, #tpu.memory_space<vmem>>, vector<8x128xf32>
    tpu.vector_store %arg9[%c0_128, %c0_129], %244 {strides = array<i32>} : memref<8x128xf32, #tpu.memory_space<vmem>>, vector<8x128xf32>,
    return
  }
  func.func @transform_0(%arg0: i32) -> (i32, i32) {
    %c0_i32 = arith.constant 0 : i32
    %c0_i32_0 = arith.constant 0 : i32
    %c0_i32_1 = arith.constant 0 : i32
    return %c0_i32, %c0_i32_0 : i32, i32
  }
  func.func @transform_1(%arg0: i32) -> (i32, i32, i32) {
    %c0_i32 = arith.constant 0 : i32
    %c0_i32_0 = arith.constant 0 : i32
    %c0_i32_1 = arith.constant 0 : i32
    %c0_i32_2 = arith.constant 0 : i32
    return %c0_i32, %c0_i32_0, %c0_i32_1 : i32, i32, i32
  }
  func.func @transform_2(%arg0: i32) -> (i32, i32, i32) {
    %c0_i32 = arith.constant 0 : i32
    %c0_i32_0 = arith.constant 0 : i32
    %c0_i32_1 = arith.constant 0 : i32
    %c0_i32_2 = arith.constant 0 : i32
    return %c0_i32, %c0_i32_0, %c0_i32_1 : i32, i32, i32
  }
  func.func @transform_3(%arg0: i32) -> (i32, i32, i32) {
    %c0_i32 = arith.constant 0 : i32
    %c0_i32_0 = arith.constant 0 : i32
    %c0_i32_1 = arith.constant 0 : i32
    %c0_i32_2 = arith.constant 0 : i32
    return %c0_i32, %c0_i32_0, %c0_i32_1 : i32, i32, i32
  }
  func.func @transform_4(%arg0: i32) -> (i32, i32, i32) {
    %c0_i32 = arith.constant 0 : i32
    %c0_i32_0 = arith.constant 0 : i32
    %c0_i32_1 = arith.constant 0 : i32
    %c0_i32_2 = arith.constant 0 : i32
    return %c0_i32, %c0_i32_0, %c0_i32_1 : i32, i32, i32
  }
  func.func @transform_5(%arg0: i32) -> (i32, i32, i32) {
    %c0_i32 = arith.constant 0 : i32
    %c0_i32_0 = arith.constant 0 : i32
    %c0_i32_1 = arith.constant 0 : i32
    %c0_i32_2 = arith.constant 0 : i32
    return %c0_i32, %c0_i32_0, %c0_i32_1 : i32, i32, i32
  }
  func.func @transform_6(%arg0: i32) -> (i32, i32, i32) {
    %c0_i32 = arith.constant 0 : i32
    %c0_i32_0 = arith.constant 0 : i32
    %c0_i32_1 = arith.constant 0 : i32
    %c0_i32_2 = arith.constant 0 : i32
    return %c0_i32, %c0_i32_0, %c0_i32_1 : i32, i32, i32
  }
  func.func @transform_7(%arg0: i32) -> (i32, i32, i32) {
    %c0_i32 = arith.constant 0 : i32
    %c0_i32_0 = arith.constant 0 : i32
    %c0_i32_1 = arith.constant 0 : i32
    %c0_i32_2 = arith.constant 0 : i32
    return %c0_i32, %c0_i32_0, %c0_i32_1 : i32, i32, i32
  }
  func.func @transform_8(%arg0: i32) -> (i32, i32) {
    %c0_i32 = arith.constant 0 : i32
    %c0_i32_0 = arith.constant 0 : i32
    %c0_i32_1 = arith.constant 0 : i32
    return %c0_i32, %c0_i32_0 : i32, i32
  }
}

</mosaic_0001>

<bundles_post_ra>
// kernel: tpu_custom_call.1
= control target key start
LH: loop header
LB: loop body
LE: loop exit
PB: predicated region body
PF: predicated region fallthrough
CT: control target
= control target key end

     0   :  { %13 = vsyncpa [#allocation3], 0  ;;  %s2699_s0 = inlined_call_operand.vmem [shape: f32[8,128], index: 0, kind: input, shape index: {}]   ;;  %s2700_s1 = inlined_call_operand.vmem [shape: f32[2,32,8], index: 1, kind: input, shape index: {}]   ;;  %s2701_s2 = inlined_call_operand.vmem [shape: f32[2,32,1], index: 2, kind: input, shape index: {}]   ;;  %s2702_s3 = inlined_call_operand.vmem [shape: f32[2,32,9], index: 3, kind: input, shape index: {}]   ;;  %s2703_s4 = inlined_call_operand.vmem [shape: f32[2,32,1], index: 4, kind: input, shape index: {}]   ;;  %s2704_s5 = inlined_call_operand.vmem [shape: f32[2,8,32], index: 5, kind: input, shape index: {}]   ;;  %s2705_s6 = inlined_call_operand.vmem [shape: f32[2,8,1], index: 6, kind: input, shape index: {}]   ;;  %s2706_s7 = inlined_call_operand.hbm [shape: f32[9,128,128], index: 7, kind: input, shape index: {}]   ;;  %s2707_s8 = inlined_call_operand.hbm [shape: f32[8,128], index: 8, kind: output, shape index: {}]  }
   0x1   :  { %14 = vsyncpa [#allocation4], 0  ;;  %s33_s29 = sshll.u32 %s2706_s7, 4  ;;  %s1865_s30 = smov [#allocation2]   ;;  %s34_s29 = int_to_ptr.hbm [resolvable:$true] %s33_s29 }
   0x2   :  { %s35_s9 = sshll.u32 %s1865_s30, 4  ;;  %s1866_s10 = smov 128   ;;  %s36_s9 = int_to_ptr.vmem [resolvable:$true] %s35_s9 }
   0x3   :  { %s1867_s11 = smov 8  }
   0x4   :  { %41 = dma.hbm_to_vmem [thread:$0]  %s34_s29, 18432, %s36_s9, [#allocation3], %s1866_s10, %s1866_s10, %s1867_s11  }
   0x5   :  { %1861 = dma.done.wait [#allocation3], 18432  }
   0x6   :  { %1862 = vsyncadd [#allocation3], 4294948864  ;;  %v2712_v0 = vmov 0   ;;  %vm85_vm0 = vcmask 64512   ;;  %v51_v1 = vld [vmem:[%s2701_s2] sm:$0xff]  ;;  %v53_v4 = vld [vmem:[%s2701_s2 + $0x10] sm:$0xff] }
   0x7   :  { %1646 = vset.pattern.permute.xlu0 %v2712_v0  ;;  %1647 = vset.pattern.permute.xlu1 %v2712_v0  ;;  %v46_v2 = vld [vmem:[%s2699_s0] sm:$0xff]  ;;  %v52_v5 = vld [vmem:[%s2701_s2 + $0x8] sm:$0xff]  ;;  %v54_v7 = vld [vmem:[%s2701_s2 + $0x18] sm:$0xff]  ;;  %v2710_v10 = vmov 1   ;;  %v2708_v46 = vmov 2   ;;  %vm857_vm1 = vcmask 261120  }
   0x8   :  { %1648 = vset.pattern.permute.xlu2 %v2712_v0  ;;  %v47_v3 = vld [vmem:[%s2700_s1] sm:$0xff]  ;;  %67 = vperm.xlu0 %1646, %v51_v1   ;;  %v48_v6 = vld [vmem:[%s2700_s1 + $0x8] sm:$0xff]  ;;  %v1955_v8 = vld [vmem:[%s2702_s3 + $0x10] sm:$0xff]  ;;  %s1877_s13 = smov [#allocation5]  }
   0x9   :  { %113 = vmatpush.msra.mxu0 %v46_v2  ;;  %77 = vperm.xlu1 %1647, %v53_v4   ;;  %v49_v9 = vld [vmem:[%s2700_s1 + $0x10] sm:$0xff]  ;;  %v1967_v11 = vld [vmem:[%s2702_s3 + $0x8] sm:$0xff]  ;;  %v50_v12 = vld [vmem:[%s2700_s1 + $0x18] sm:$0xff]  ;;  %s1593_s7 = sshll.u32 %s1877_s13, 4  ;;  %s1594_s7 = int_to_ptr.vmem [resolvable:$true] %s1593_s7 }
   0xa   :  { %1605 = vmatmul.msk.f32.vlgmr.msra.gmra.mxu0 %vm85_vm0, %v47_v3  ;;  %v1976_v13 = vld [vmem:[#allocation2 + $0x78] sm:$0xff]  ;;  %v1987_v18 = vld [vmem:[#allocation2 + $0x70] sm:$0xff]  ;;  %v1994_v22 = vld [vmem:[#allocation2 + $0x68] sm:$0xff] }
   0xb   :  { %v1978_v14 = vld [vmem:[#allocation2 + $0xf8] sm:$0xff]  ;;  %179 = vmatpush.msra.mxu1 %v1976_v13  ;;  %v1990_v19 = vld [vmem:[#allocation2 + $0xf0] sm:$0xff]  ;;  %v1996_v23 = vld [vmem:[#allocation2 + $0xe8] sm:$0xff] }
   0xc   :  { %v318_v15 = vld [vmem:[#allocation2 + $0x178] sm:$0xff]  ;;  %249 = vmatpush.msra.mxu2 %v1978_v14  ;;  %v317_v20 = vld [vmem:[#allocation2 + $0x170] sm:$0xff]  ;;  %v316_v24 = vld [vmem:[#allocation2 + $0x168] sm:$0xff] }
   0xd   :  { %v1985_v16 = vld [vmem:[%s2702_s3 + $0x18] sm:$0xff]  ;;  %319 = vmatpush.msra.mxu3 %v318_v15  ;;  %v387_v21 = vld [vmem:[#allocation2 + $0x1f0] sm:$0xff]  ;;  %180 = vmatpush.msra.mxu1 %v1987_v18  ;;  %v2003_v25 = vld [vmem:[%s2702_s3] sm:$0xff] }
   0xe   :  { %v388_v17 = vld [vmem:[#allocation2 + $0x1f8] sm:$0xff]  ;;  %225 = vperm.xlu2 %1648, %v1985_v16   ;;  %250 = vmatpush.msra.mxu2 %v1990_v19  ;;  %v386_v26 = vld [vmem:[#allocation2 + $0x1e8] sm:$0xff]  ;;  %v2005_v27 = vld [vmem:[#allocation2 + $0x60] sm:$0xff] }
   0xf   :  { %389 = vmatpush.msrb.mxu0 %v388_v17  ;;  %320 = vmatpush.msra.mxu3 %v317_v20  ;;  %v2008_v28 = vld [vmem:[#allocation2 + $0xe0] sm:$0xff]  ;;  %v2012_v31 = vld [vmem:[#allocation2 + $0x58] sm:$0xff]  ;;  %v2018_v35 = vld [vmem:[#allocation2 + $0x50] sm:$0xff] }
  0x10   :  { %72 = vperm.xlu0 %1646, %v52_v5   ;;  %181 = vmatpush.msra.mxu1 %v1994_v22  ;;  %v315_v29 = vld [vmem:[#allocation2 + $0x160] sm:$0xff]  ;;  %v2014_v32 = vld [vmem:[#allocation2 + $0xd8] sm:$0xff]  ;;  %v2020_v36 = vld [vmem:[#allocation2 + $0xd0] sm:$0xff] }
  0x11   :  { %82 = vperm.xlu1 %1647, %v54_v7   ;;  %390 = vmatpush.msrb.mxu0 %v387_v21  ;;  %v385_v30 = vld [vmem:[#allocation2 + $0x1e0] sm:$0xff]  ;;  %v314_v33 = vld [vmem:[#allocation2 + $0x158] sm:$0xff]  ;;  %v313_v37 = vld [vmem:[#allocation2 + $0x150] sm:$0xff]  ;;  %v2714_v7 = vmov 4  }
  0x12   :  { %1606 = vmatmul.msk.f32.gmra.mxu0 %vm85_vm0, %v48_v6  ;;  %251 = vmatpush.msra.mxu2 %v1996_v23  ;;  %v384_v34 = vld [vmem:[#allocation2 + $0x1d8] sm:$0xff]  ;;  %v383_v38 = vld [vmem:[#allocation2 + $0x1d0] sm:$0xff]  ;;  %v2025_v39 = vld [vmem:[#allocation2 + $0x48] sm:$0xff] }
  0x13   :  { %321 = vmatpush.msra.mxu3 %v316_v24  ;;  %391 = vmatpush.msrb.mxu0 %v386_v26  ;;  %v2027_v40 = vld [vmem:[#allocation2 + $0xc8] sm:$0xff]  ;;  %v2031_v43 = vld [vmem:[#allocation2 + $0x40] sm:$0xff]  ;;  %v2037_v48 = vld [vmem:[#allocation2 + $0x38] sm:$0xff] }
  0x14   :  { %182 = vmatpush.msra.mxu1 %v2005_v27  ;;  %252 = vmatpush.msra.mxu2 %v2008_v28  ;;  %v312_v41 = vld [vmem:[#allocation2 + $0x148] sm:$0xff]  ;;  %v2034_v44 = vld [vmem:[#allocation2 + $0xc0] sm:$0xff]  ;;  %v2041_v49 = vld [vmem:[#allocation2 + $0xb8] sm:$0xff] }
  0x15   :  { %322 = vmatpush.msra.mxu3 %v315_v29  ;;  %392 = vmatpush.msrb.mxu0 %v385_v30  ;;  %v382_v42 = vld [vmem:[#allocation2 + $0x1c8] sm:$0xff]  ;;  %v311_v45 = vld [vmem:[#allocation2 + $0x140] sm:$0xff]  ;;  %v310_v50 = vld [vmem:[#allocation2 + $0x138] sm:$0xff] }
  0x16   :  { %183 = vmatpush.msra.mxu1 %v2012_v31  ;;  %253 = vmatpush.msra.mxu2 %v2014_v32  ;;  %v381_v47 = vld [vmem:[#allocation2 + $0x1c0] sm:$0xff]  ;;  %v380_v51 = vld [vmem:[#allocation2 + $0x1b8] sm:$0xff]  ;;  %v2045_v52 = vld [vmem:[#allocation2 + $0x30] sm:$0xff] }
  0x17   :  { %323 = vmatpush.msra.mxu3 %v314_v33  ;;  %1649 = vset.pattern.permute.xlu2 %v2710_v10  ;;  %v2047_v53 = vld [vmem:[#allocation2 + $0xb0] sm:$0xff]  ;;  %v2051_v56 = vld [vmem:[#allocation2 + $0x28] sm:$0xff]  ;;  %v2059_v60 = vld [vmem:[#allocation2 + $0x20] sm:$0xff] }
  0x18   :  { %220 = vperm.xlu0 %1646, %v1955_v8   ;;  %393 = vmatpush.msrb.mxu0 %v384_v34  ;;  %v309_v54 = vld [vmem:[#allocation2 + $0x130] sm:$0xff]  ;;  %v2055_v57 = vld [vmem:[#allocation2 + $0xa8] sm:$0xff]  ;;  %v2061_v61 = vld [vmem:[#allocation2 + $0xa0] sm:$0xff] }
  0x19   :  { %1650 = vset.pattern.permute.xlu1 %v2710_v10  ;;  %291 = vperm.xlu2 %1649, %v1985_v16   ;;  %v379_v55 = vld [vmem:[#allocation2 + $0x1b0] sm:$0xff]  ;;  %v308_v58 = vld [vmem:[#allocation2 + $0x128] sm:$0xff]  ;;  %v307_v62 = vld [vmem:[#allocation2 + $0x120] sm:$0xff] }
  0x1a   :  { %1607 = vmatmul.msk.f32.gmra.mxu0 %vm85_vm0, %v49_v9  ;;  %287 = vperm.xlu1 %1650, %v1955_v8   ;;  %v378_v59 = vld [vmem:[#allocation2 + $0x1a8] sm:$0xff]  ;;  %v377_v63 = vld [vmem:[#allocation2 + $0x1a0] sm:$0xff]  ;;  %v2065_v1 = vld [vmem:[#allocation2 + $0x18] sm:$0xff] }
  0x1b   :  { %184 = vmatpush.msra.mxu1 %v2018_v35  ;;  %254 = vmatpush.msra.mxu2 %v2020_v36  ;;  %v2067_v2 = vld [vmem:[#allocation2 + $0x98] sm:$0xff]  ;;  %v2073_v5 = vld [vmem:[#allocation2 + $0x10] sm:$0xff]  ;;  %v2079_v15 = vld [vmem:[#allocation2 + $0x8] sm:$0xff] }
  0x1c   :  { %324 = vmatpush.msra.mxu3 %v313_v37  ;;  %394 = vmatpush.msrb.mxu0 %v383_v38  ;;  %v306_v3 = vld [vmem:[#allocation2 + $0x118] sm:$0xff]  ;;  %v2075_v6 = vld [vmem:[#allocation2 + $0x90] sm:$0xff]  ;;  %v2083_v17 = vld [vmem:[#allocation2 + $0x88] sm:$0xff] }
  0x1d   :  { %185 = vmatpush.msra.mxu1 %v2025_v39  ;;  %255 = vmatpush.msra.mxu2 %v2027_v40  ;;  %v376_v4 = vld [vmem:[#allocation2 + $0x198] sm:$0xff]  ;;  %v305_v9 = vld [vmem:[#allocation2 + $0x110] sm:$0xff]  ;;  %v304_v20 = vld [vmem:[#allocation2 + $0x108] sm:$0xff] }
  0x1e   :  { %325 = vmatpush.msra.mxu3 %v312_v41  ;;  %395 = vmatpush.msrb.mxu0 %v382_v42  ;;  %v374_v21 = vld [vmem:[#allocation2 + $0x188] sm:$0xff]  ;;  %v2087_v24 = vld [vmem:[#allocation2] sm:$0xff]  ;;  %v2093_v33 = vld [vmem:[#allocation2 + $0x278] sm:$0xff] }
  0x1f   :  { %186 = vmatpush.msra.mxu1 %v2031_v43  ;;  %256 = vmatpush.msra.mxu2 %v2034_v44  ;;  %v2089_v26 = vld [vmem:[#allocation2 + $0x80] sm:$0xff]  ;;  %v2097_v34 = vld [vmem:[#allocation2 + $0x2f8] sm:$0xff]  ;;  %v2101_v42 = vld [vmem:[#allocation2 + $0x270] sm:$0xff] }
  0x20   :  { %215 = vperm.xlu0 %1646, %v1967_v11   ;;  %326 = vmatpush.msra.mxu3 %v311_v45  ;;  %2757 = vst [vmem:[#allocation8_spill] sm:$0xff] %v2089_v26  ;;  %v303_v29 = vld [vmem:[#allocation2 + $0x100] sm:$0xff]  ;;  %v598_v37 = vld [vmem:[#allocation2 + $0x378] sm:$0xff]  ;;  %v2103_v45 = vld [vmem:[#allocation2 + $0x2f0] sm:$0xff] }
  0x21   :  { %396 = vmatpush.msrb.mxu0 %v381_v47  ;;  %187 = vmatpush.msra.mxu1 %v2037_v48  ;;  %v373_v30 = vld [vmem:[#allocation2 + $0x180] sm:$0xff]  ;;  %2758 = vst [vmem:[#allocation9_spill] sm:$0xff] %v2097_v34  ;;  %v668_v41 = vld [vmem:[#allocation2 + $0x3f8] sm:$0xff] }
  0x22   :  { %1608 = vmatmul.msk.f32.gmra.mxu0 %vm85_vm0, %v50_v12  ;;  %283 = vperm.xlu1 %1650, %v1967_v11   ;;  %v375_v12 = vld [vmem:[#allocation2 + $0x190] sm:$0xff]  ;;  %2759 = vst [vmem:[#allocation10_spill] sm:$0xff] %v2103_v45 }
  0x23   :  { %257 = vmatpush.msra.mxu2 %v2041_v49  ;;  %327 = vmatpush.msra.mxu3 %v310_v50  ;;  %v597_v50 = vld [vmem:[#allocation2 + $0x370] sm:$0xff] }
  0x24   :  { %397 = vmatpush.msrb.mxu0 %v380_v51  ;;  %1651 = vset.pattern.permute.xlu2 %v2708_v46 }
  0x25   :  { %188 = vmatpush.msra.mxu1 %v2045_v52  ;;  %258 = vmatpush.msra.mxu2 %v2047_v53 }
  0x26   :  { %328 = vmatpush.msra.mxu3 %v309_v54  ;;  %361 = vperm.xlu2 %1651, %v1985_v16   ;;  %v2717_v54 = vmov 3  }
  0x27   :  { %398 = vmatpush.msrb.mxu0 %v379_v55  ;;  %189 = vmatpush.msra.mxu1 %v2051_v56  ;;  %v667_v55 = vld [vmem:[#allocation2 + $0x3f0] sm:$0xff] }
  0x28   :  { %259 = vmatpush.msra.mxu2 %v2055_v57  ;;  %329 = vmatpush.msra.mxu3 %v308_v58  ;;  %v2111_v58 = vld [vmem:[#allocation2 + $0x268] sm:$0xff] }
  0x29   :  { %399 = vmatpush.msrb.mxu0 %v378_v59  ;;  %190 = vmatpush.msra.mxu1 %v2059_v60 }
  0x2a   :  { %1652 = vset.pattern.permute.xlu1 %v2712_v0  ;;  %260 = vmatpush.msra.mxu2 %v2061_v61 }
  0x2b   :  { %210 = vperm.xlu1 %1652, %v2003_v25   ;;  %330 = vmatpush.msra.mxu3 %v307_v62  ;;  %v2116_v62 = vld [vmem:[#allocation2 + $0x2e8] sm:$0xff] }
  0x2c   :  { %400 = vmatpush.msrb.mxu0 %v377_v63  ;;  %191 = vmatpush.msra.mxu1 %v2065_v1  ;;  %2760 = vst [vmem:[#allocation11_spill] sm:$0xff] %v2116_v62  ;;  %v596_v63 = vld [vmem:[#allocation2 + $0x368] sm:$0xff] }
  0x2d   :  { %261 = vmatpush.msra.mxu2 %v2067_v2  ;;  %331 = vmatpush.msra.mxu3 %v306_v3  ;;  %v666_v3 = vld [vmem:[#allocation2 + $0x3e8] sm:$0xff] }
  0x2e   :  { %1656 = vset.pattern.permute.xlu0 %v2714_v7  ;;  %401 = vmatpush.msrb.mxu0 %v376_v4  ;;  %v2119_v4 = vld [vmem:[#allocation2 + $0x260] sm:$0xff] }
  0x2f   :  { %501 = vperm.xlu0 %1656, %v1985_v16   ;;  %192 = vmatpush.msra.mxu1 %v2073_v5 }
  0x30   :  { %262 = vmatpush.msra.mxu2 %v2075_v6  ;;  %332 = vmatpush.msra.mxu3 %v305_v9 }
  0x31   :  { %357 = vperm.xlu2 %1651, %v1955_v8   ;;  %402 = vmatpush.msrb.mxu0 %v375_v12  ;;  %v2124_v12 = vld [vmem:[#allocation2 + $0x2e0] sm:$0xff] }
  0x32   :  { %193 = vmatpush.msra.mxu1 %v2079_v15  ;;  %263 = vmatpush.msra.mxu2 %v2083_v17  ;;  %2761 = vst [vmem:[#allocation12_spill] sm:$0xff] %v2124_v12 }
  0x33   :  { %1654 = vset.pattern.permute.xlu1 %v2708_v46  ;;  %333 = vmatpush.msra.mxu3 %v304_v20  ;;  %v595_v20 = vld [vmem:[#allocation2 + $0x360] sm:$0xff] }
  0x34   :  { %353 = vperm.xlu1 %1654, %v1967_v11   ;;  %403 = vmatpush.msrb.mxu0 %v374_v21  ;;  %v665_v21 = vld [vmem:[#allocation2 + $0x3e0] sm:$0xff] }
  0x35   :  { %194 = vmatpush.msra.mxu1 %v2087_v24  ;;  %264 = vmatpush.msra.mxu2 %v2089_v26  ;;  %v2215_v26 = vld [vmem:[#allocation2 + $0x218] sm:$0xff] }
  0x36   :  { %334 = vmatpush.msra.mxu3 %v303_v29  ;;  %404 = vmatpush.msrb.mxu0 %v373_v30  ;;  %v2128_v30 = vld [vmem:[#allocation2 + $0x258] sm:$0xff]  ;;  %2774 = vst [vmem:[#allocation25_spill] sm:$0xff] %v2215_v26 }
  0x37   :  { %459 = vmatpush.msrb.mxu1 %v2093_v33  ;;  %529 = vmatpush.msrb.mxu2 %v2097_v34 }
  0x38   :  { %599 = vmatpush.msrb.mxu3 %v598_v37  ;;  %669 = vmatpush.msra.mxu0 %v668_v41  ;;  %v2130_v37 = vld [vmem:[#allocation2 + $0x2d8] sm:$0xff] }
  0x39   :  { %1657 = vset.pattern.permute.xlu0 %v2717_v54  ;;  %460 = vmatpush.msrb.mxu1 %v2101_v42  ;;  %2762 = vst [vmem:[#allocation13_spill] sm:$0xff] %v2130_v37 }
  0x3a   :  { %530 = vmatpush.msrb.mxu2 %v2103_v45  ;;  %600 = vmatpush.msrb.mxu3 %v597_v50  ;;  %v664_v50 = vld [vmem:[#allocation2 + $0x3d8] sm:$0xff] }
  0x3b   :  { %1653 = vset.pattern.permute.xlu2 %v2710_v10  ;;  %431 = vperm.xlu0 %1657, %v1985_v16  }
  0x3c   :  { %349 = vperm.xlu1 %1654, %v2003_v25   ;;  %670 = vmatpush.msra.mxu0 %v667_v55 }
  0x3d   :  { %279 = vperm.xlu2 %1653, %v2003_v25   ;;  %461 = vmatpush.msrb.mxu1 %v2111_v58 }
  0x3e   :  { %531 = vmatpush.msrb.mxu2 %v2116_v62  ;;  %601 = vmatpush.msrb.mxu3 %v596_v63  ;;  %v2137_v63 = vld [vmem:[#allocation2 + $0x250] sm:$0xff]  ;;  %v2724_v62 = vmov 6  }
  0x3f   :  { %671 = vmatpush.msra.mxu0 %v666_v3  ;;  %462 = vmatpush.msrb.mxu1 %v2119_v4  ;;  %v2139_v3 = vld [vmem:[#allocation2 + $0x2d0] sm:$0xff] }
  0x40   :  { %532 = vmatpush.msrb.mxu2 %v2124_v12  ;;  %602 = vmatpush.msrb.mxu3 %v595_v20  ;;  %2763 = vst [vmem:[#allocation14_spill] sm:$0xff] %v2139_v3 }
  0x41   :  { %672 = vmatpush.msra.mxu0 %v665_v21  ;;  %463 = vmatpush.msrb.mxu1 %v2128_v30  ;;  %v2147_v21 = vld [vmem:[#allocation2 + $0x248] sm:$0xff] }
  0x42   :  { %533 = vmatpush.msrb.mxu2 %v2130_v37 }
  0x43   :  { %673 = vmatpush.msra.mxu0 %v664_v50  ;;  %464 = vmatpush.msrb.mxu1 %v2137_v63  ;;  %v2154_v50 = vld [vmem:[#allocation2 + $0x240] sm:$0xff] }
  0x44   :  { %1658 = vset.pattern.permute.xlu1 %v2714_v7  ;;  %534 = vmatpush.msrb.mxu2 %v2139_v3  ;;  %v2158_v7 = vld [vmem:[#allocation2 + $0x2c0] sm:$0xff] }
  0x45   :  { %497 = vperm.xlu1 %1658, %v1955_v8   ;;  %419 = vperm.xlu0 %1657, %v2003_v25   ;;  %2765 = vst [vmem:[#allocation16_spill] sm:$0xff] %v2158_v7 }
  0x46   :  { %1655 = vset.pattern.permute.xlu2 %v2717_v54  ;;  %465 = vmatpush.msrb.mxu1 %v2147_v21  ;;  %v2168_v54 = vld [vmem:[#allocation2 + $0x2b8] sm:$0xff] }
  0x47   :  { %427 = vperm.xlu2 %1655, %v1955_v8   ;;  %2766 = vst [vmem:[#allocation17_spill] sm:$0xff] %v2168_v54 }
  0x48   :  { %466 = vmatpush.msrb.mxu1 %v2154_v50 }
  0x4d   :  { %493 = vperm.xlu1 %1658, %v1967_v11  }
  0x4f   :  { %423 = vperm.xlu2 %1655, %v1967_v11  }
  0x55   :  { %1660 = vset.pattern.permute.xlu1 %v2724_v62  ;;  %v2189_v62 = vld [vmem:[#allocation2 + $0x228] sm:$0xff] }
  0x56   :  { %641 = vperm.xlu1 %1660, %v1985_v16  }
  0x5e   :  { %637 = vperm.xlu1 %1660, %v1955_v8  }
  0x7a   :  { %v68_v38 = vpop.permute.xlu0 %67 }
  0x7b   :  { %v78_v10 = vpop.permute.xlu1 %77 }
  0x83   :  { %v83_v45 = vpop.permute.xlu1 %82 }
  0x87   :  { %v115_v47 = vpop.f32.mrf.mxu0 }
  0x88   :  { %v2106_v51 = vadd.f32 %v115_v47, %v68_v38  ;;  %v73_v38 = vpop.permute.xlu0 %72  ;;  %v594_v47 = vld [vmem:[#allocation2 + $0x358] sm:$0xff] }
  0x89   :  { %603 = vmatpush.msrb.mxu3 %v594_v47  ;;  %v662_v47 = vld [vmem:[#allocation2 + $0x3c8] sm:$0xff] }
  0x8a   :  { %v131_v59 = vmul.f32 %v2106_v51, %v2106_v51 }
  0x8c   :  { %v135_v9 = vmul.f32 %v131_v59, %v2106_v51 }
  0x8e   :  { %v139_v29 = vmul.f32 0.044715, %v135_v9  ;;  %v593_v9 = vld [vmem:[#allocation2 + $0x350] sm:$0xff] }
  0x8f   :  { %v118_v41 = vpop.f32.mrf.mxu0  ;;  %604 = vmatpush.msrb.mxu3 %v593_v9  ;;  %v661_v9 = vld [vmem:[#allocation2 + $0x3c0] sm:$0xff] }
  0x90   :  { %v143_v55 = vadd.f32 %v139_v29, %v2106_v51  ;;  %v2134_v59 = vadd.f32 %v118_v41, %v73_v38  ;;  %v663_v29 = vld [vmem:[#allocation2 + $0x3d0] sm:$0xff]  ;;  %v2149_v38 = vld [vmem:[#allocation2 + $0x2c8] sm:$0xff] }
  0x91   :  { %2764 = vst [vmem:[#allocation15_spill] sm:$0xff] %v2149_v38  ;;  %674 = vmatpush.msra.mxu0 %v663_v29  ;;  %535 = vmatpush.msrb.mxu2 %v2149_v38  ;;  %v590_v38 = vld [vmem:[#allocation2 + $0x338] sm:$0xff] }
  0x92   :  { %v147_v46 = vmul.f32 0.7978846, %v143_v55  ;;  %v132_v20 = vmul.f32 %v2134_v59, %v2134_v59  ;;  %v592_v55 = vld [vmem:[#allocation2 + $0x348] sm:$0xff] }
  0x93   :  { %605 = vmatpush.msrb.mxu3 %v592_v55  ;;  %675 = vmatpush.msra.mxu0 %v662_v47  ;;  %v127_v47 = vmul.f32 0.5, %v2106_v51 }
  0x94   :  { %1703 = vtanh.f32 %v147_v46  ;;  %v136_v41 = vmul.f32 %v132_v20, %v2134_v59  ;;  %v591_v46 = vld [vmem:[#allocation2 + $0x340] sm:$0xff]  ;;  %536 = vmatpush.msrb.mxu2 %v2158_v7 }
  0x95   :  { %606 = vmatpush.msrb.mxu3 %v591_v46  ;;  %676 = vmatpush.msra.mxu0 %v661_v9  ;;  %v2178_v46 = vld [vmem:[#allocation2 + $0x2b0] sm:$0xff] }
  0x96   :  { %v140_v0 = vmul.f32 0.044715, %v136_v41  ;;  %v2165_v41 = vld [vmem:[#allocation2 + $0x238] sm:$0xff]  ;;  %2767 = vst [vmem:[#allocation18_spill] sm:$0xff] %v2178_v46  ;;  %537 = vmatpush.msrb.mxu2 %v2168_v54 }
  0x97   :  { %v121_v20 = vpop.f32.mrf.mxu0  ;;  %467 = vmatpush.msrb.mxu1 %v2165_v41  ;;  %607 = vmatpush.msrb.mxu3 %v590_v38  ;;  %v2195_v38 = vld [vmem:[#allocation2 + $0x328] sm:$0xff] }
  0x98   :  { %v144_v29 = vadd.f32 %v140_v0, %v2134_v59  ;;  %v2162_v3 = vadd.f32 %v121_v20, %v78_v10  ;;  %v660_v0 = vld [vmem:[#allocation2 + $0x3b8] sm:$0xff]  ;;  %v2173_v10 = vld [vmem:[#allocation2 + $0x230] sm:$0xff]  ;;  %538 = vmatpush.msrb.mxu2 %v2178_v46  ;;  %2770 = vst [vmem:[#allocation21_spill] sm:$0xff] %v2195_v38 }
  0x99   :  { %677 = vmatpush.msra.mxu0 %v660_v0  ;;  %468 = vmatpush.msrb.mxu1 %v2173_v10 }
  0x9a   :  { %v1704_v37 = vpop.eup %1703  ;;  %v148_v55 = vmul.f32 0.7978846, %v144_v29  ;;  %v133_v12 = vmul.f32 %v2162_v3, %v2162_v3  ;;  %v2180_v29 = vld [vmem:[#allocation2 + $0x330] sm:$0xff] }
  0x9b   :  { %v155_v20 = vadd.f32 1.0, %v1704_v37  ;;  %2768 = vst [vmem:[#allocation19_spill] sm:$0xff] %v2180_v29  ;;  %608 = vmatpush.msrb.mxu3 %v2180_v29  ;;  %v659_v37 = vld [vmem:[#allocation2 + $0x3b0] sm:$0xff]  ;;  %469 = vmatpush.msrb.mxu1 %v2189_v62  ;;  %v2205_v29 = vld [vmem:[#allocation2 + $0x2a0] sm:$0xff] }
  0x9c   :  { %1705 = vtanh.f32 %v148_v55  ;;  %v137_v7 = vmul.f32 %v133_v12, %v2162_v3  ;;  %v2193_v12 = vld [vmem:[#allocation2 + $0x2a8] sm:$0xff]  ;;  %678 = vmatpush.msra.mxu0 %v659_v37  ;;  %2772 = vst [vmem:[#allocation23_spill] sm:$0xff] %v2205_v29  ;;  %v128_v37 = vmul.f32 0.5, %v2134_v59  ;;  %v2225_v59 = vld [vmem:[#allocation2 + $0x298] sm:$0xff] }
  0x9d   :  { %v2184_v9 = vmul.f32 %v155_v20, %v127_v47  ;;  %2769 = vst [vmem:[#allocation20_spill] sm:$0xff] %v2193_v12  ;;  %v658_v47 = vld [vmem:[#allocation2 + $0x3a8] sm:$0xff]  ;;  %v2203_v20 = vld [vmem:[#allocation2 + $0x220] sm:$0xff]  ;;  %539 = vmatpush.msrb.mxu2 %v2193_v12  ;;  %609 = vmatpush.msrb.mxu3 %v2195_v38 }
  0x9e   :  { %v141_v51 = vmul.f32 0.044715, %v137_v7  ;;  %2771 = vst [vmem:[#allocation22_spill] sm:$0xff] %v2203_v20  ;;  %679 = vmatpush.msra.mxu0 %v658_v47  ;;  %470 = vmatpush.msrb.mxu1 %v2203_v20  ;;  %v2234_v47 = vld [vmem:[#allocation2 + $0x210] sm:$0xff] }
  0x9f   :  { %v124_v55 = vpop.f32.mrf.mxu0  ;;  %195 = vmatmul.f32.vlgmr.msra.gmra.mxu1 %v2184_v9  ;;  %265 = vmatmul.f32.vlgmr.msra.gmra.mxu2 %v2184_v9  ;;  %2775 = vst [vmem:[#allocation26_spill] sm:$0xff] %v2225_v59 }
  0xa0   :  { %v145_v0 = vadd.f32 %v141_v51, %v2162_v3  ;;  %v2198_v7 = vadd.f32 %v124_v55, %v83_v45  ;;  %335 = vmatmul.f32.vlgmr.msra.gmra.mxu3 %v2184_v9  ;;  %405 = vmatmul.f32.vlgmr.msrb.gmra.mxu0 %v2184_v9  ;;  %v2211_v45 = vld [vmem:[#allocation2 + $0x320] sm:$0xff] }
  0xa1   :  { %2773 = vst [vmem:[#allocation24_spill] sm:$0xff] %v2211_v45  ;;  %v657_v51 = vld [vmem:[#allocation2 + $0x3a0] sm:$0xff]  ;;  %540 = vmatpush.msrb.mxu2 %v2205_v29  ;;  %610 = vmatpush.msrb.mxu3 %v2211_v45  ;;  %v2748_v45 = vmov 5   ;;  %v2243_v29 = vld [vmem:[#allocation2 + $0x208] sm:$0xff] }
  0xa2   :  { %v1706_v46 = vpop.eup %1705  ;;  %v149_v54 = vmul.f32 0.7978846, %v145_v0  ;;  %v134_v34 = vmul.f32 %v2198_v7, %v2198_v7  ;;  %680 = vmatpush.msra.mxu0 %v657_v51  ;;  %471 = vmatpush.msrb.mxu1 %v2215_v26  ;;  %v2238_v51 = vld [vmem:[#allocation2 + $0x290] sm:$0xff]  ;;  %v129_v26 = vmul.f32 0.5, %v2162_v3  ;;  %v654_v3 = vld [vmem:[#allocation2 + $0x388] sm:$0xff] }
  0xa3   :  { %v156_v55 = vadd.f32 1.0, %v1706_v46  ;;  %v2227_v46 = vld [vmem:[#allocation2 + $0x318] sm:$0xff]  ;;  %541 = vmatpush.msrb.mxu2 %v2225_v59  ;;  %2777 = vst [vmem:[#allocation28_spill] sm:$0xff] %v2238_v51  ;;  %1662 = vset.pattern.permute.xlu0 %v2748_v45  ;;  %v2250_v59 = vld [vmem:[#allocation2 + $0x308] sm:$0xff] }
  0xa4   :  { %1707 = vtanh.f32 %v149_v54  ;;  %v138_v0 = vmul.f32 %v134_v34, %v2198_v7  ;;  %2776 = vst [vmem:[#allocation27_spill] sm:$0xff] %v2227_v46  ;;  %v656_v34 = vld [vmem:[#allocation2 + $0x398] sm:$0xff]  ;;  %611 = vmatpush.msrb.mxu3 %v2227_v46  ;;  %563 = vperm.xlu0 %1662, %v1967_v11   ;;  %v2248_v46 = vld [vmem:[#allocation2 + $0x288] sm:$0xff] }
  0xa5   :  { %v2220_v12 = vmul.f32 %v156_v55, %v128_v37  ;;  %v2240_v37 = vld [vmem:[#allocation2 + $0x310] sm:$0xff]  ;;  %681 = vmatpush.msra.mxu0 %v656_v34  ;;  %472 = vmatpush.msrb.mxu1 %v2234_v47  ;;  %2779 = vst [vmem:[#allocation30_spill] sm:$0xff] %v2248_v46 }
  0xa6   :  { %v142_v38 = vmul.f32 0.044715, %v138_v0  ;;  %2778 = vst [vmem:[#allocation29_spill] sm:$0xff] %v2240_v37  ;;  %542 = vmatpush.msrb.mxu2 %v2238_v51  ;;  %612 = vmatpush.msrb.mxu3 %v2240_v37  ;;  %v737_v51 = vld [vmem:[#allocation2 + $0x470] sm:$0xff] }
  0xa7   :  { %198 = vmatmul.f32.gmra.mxu1 %v2220_v12  ;;  %268 = vmatmul.f32.gmra.mxu2 %v2220_v12  ;;  %2780 = vst [vmem:[#allocation31_spill] sm:$0xff] %v2250_v59 }
  0xa8   :  { %v146_v54 = vadd.f32 %v142_v38, %v2198_v7  ;;  %338 = vmatmul.f32.gmra.mxu3 %v2220_v12  ;;  %408 = vmatmul.f32.gmra.mxu0 %v2220_v12  ;;  %v655_v38 = vld [vmem:[#allocation2 + $0x390] sm:$0xff] }
  0xa9   :  { %682 = vmatpush.msra.mxu0 %v655_v38  ;;  %473 = vmatpush.msrb.mxu1 %v2243_v29  ;;  %v738_v38 = vld [vmem:[#allocation2 + $0x478] sm:$0xff] }
  0xaa   :  { %v1708_v55 = vpop.eup %1707  ;;  %v150_v0 = vmul.f32 0.7978846, %v146_v54  ;;  %543 = vmatpush.msrb.mxu2 %v2248_v46  ;;  %613 = vmatpush.msrb.mxu3 %v2250_v59  ;;  %v2261_v54 = vld [vmem:[#allocation2 + $0x200] sm:$0xff]  ;;  %v130_v59 = vmul.f32 0.5, %v2198_v7  ;;  %v736_v7 = vld [vmem:[#allocation2 + $0x468] sm:$0xff] }
  0xab   :  { %v157_v20 = vadd.f32 1.0, %v1708_v55  ;;  %1659 = vset.pattern.permute.xlu2 %v2748_v45  ;;  %683 = vmatpush.msra.mxu0 %v654_v3  ;;  %v653_v55 = vld [vmem:[#allocation2 + $0x380] sm:$0xff]  ;;  %v2744_v3 = vmov 7  }
  0xac   :  { %1709 = vtanh.f32 %v150_v0  ;;  %571 = vperm.xlu2 %1659, %v1985_v16   ;;  %474 = vmatpush.msrb.mxu1 %v2261_v54 }
  0xad   :  { %v2254_v34 = vmul.f32 %v157_v20, %v129_v26  ;;  %v2265_v26 = vld [vmem:[#allocation2 + $0x280] sm:$0xff]  ;;  %684 = vmatpush.msra.mxu0 %v653_v55  ;;  %1664 = vset.pattern.permute.xlu1 %v2748_v45  ;;  %v729_v55 = vld [vmem:[#allocation2 + $0x430] sm:$0xff] }
  0xae   :  { %v2267_v20 = vld [vmem:[#allocation2 + $0x300] sm:$0xff]  ;;  %544 = vmatpush.msrb.mxu2 %v2265_v26  ;;  %559 = vperm.xlu1 %1664, %v2003_v25  }
  0xaf   :  { %201 = vmatmul.f32.gmra.mxu1 %v2254_v34  ;;  %271 = vmatmul.f32.gmra.mxu2 %v2254_v34 }
  0xb0   :  { %341 = vmatmul.f32.gmra.mxu3 %v2254_v34  ;;  %411 = vmatmul.f32.gmra.mxu0 %v2254_v34 }
  0xb1   :  { %614 = vmatpush.msrb.mxu3 %v2267_v20  ;;  %739 = vmatpush.msra.mxu1 %v738_v38  ;;  %v2327_v38 = vpop.permute.xlu2 %225 }
  0xb2   :  { %v1710_v0 = vpop.eup %1709  ;;  %1666 = vset.pattern.permute.xlu0 %v2744_v3  ;;  %1012 = vmatpush.msrb.mxu0 %v1976_v13  ;;  %v2746_v13 = vmov 8  }
  0xb3   :  { %v158_v37 = vadd.f32 1.0, %v1710_v0  ;;  %707 = vperm.xlu0 %1666, %v1955_v8   ;;  %740 = vmatpush.msra.mxu1 %v737_v51  ;;  %v2781_v51 = vmov 4   ;;  %v725_v0 = vld [vmem:[#allocation2 + $0x410] sm:$0xff] }
  0xb4   :  { %567 = vperm.xlu2 %1659, %v1955_v8   ;;  %1013 = vmatpush.msrb.mxu0 %v1987_v18  ;;  %v733_v18 = vld [vmem:[#allocation2 + $0x450] sm:$0xff] }
  0xb5   :  { %v2276_v46 = vmul.f32 %v158_v37, %v130_v59  ;;  %v735_v59 = vld [vmem:[#allocation2 + $0x460] sm:$0xff]  ;;  %741 = vmatpush.msra.mxu1 %v736_v7  ;;  %v734_v37 = vld [vmem:[#allocation2 + $0x458] sm:$0xff]  ;;  %v61_v7 = vld [vmem:[%s2703_s4 + $0x10] sm:$0xff] }
  0xb6   :  { %1014 = vmatpush.msrb.mxu0 %v1994_v22  ;;  %1667 = vset.pattern.permute.xlu1 %v2746_v13  ;;  %v732_v22 = vld [vmem:[#allocation2 + $0x448] sm:$0xff] }
  0xb7   :  { %204 = vmatmul.f32.gmra.mxu1 %v2276_v46  ;;  %274 = vmatmul.f32.gmra.mxu2 %v2276_v46 }
  0xb8   :  { %344 = vmatmul.f32.gmra.mxu3 %v2276_v46  ;;  %414 = vmatmul.f32.gmra.mxu0 %v2276_v46 }
  0xb9   :  { %742 = vmatpush.msra.mxu1 %v735_v59  ;;  %781 = vperm.xlu1 %1667, %v1985_v16  }
  0xba   :  { %1015 = vmatpush.msrb.mxu0 %v2005_v27  ;;  %v731_v27 = vld [vmem:[#allocation2 + $0x440] sm:$0xff] }
  0xbb   :  { %743 = vmatpush.msra.mxu1 %v734_v37  ;;  %699 = vperm.xlu0 %1666, %v2003_v25  }
  0xbc   :  { %1661 = vset.pattern.permute.xlu2 %v2781_v51  ;;  %1016 = vmatpush.msrb.mxu0 %v2012_v31  ;;  %v730_v31 = vld [vmem:[#allocation2 + $0x438] sm:$0xff] }
  0xbd   :  { %744 = vmatpush.msra.mxu1 %v733_v18  ;;  %489 = vperm.xlu2 %1661, %v2003_v25  }
  0xbe   :  { %1017 = vmatpush.msrb.mxu0 %v2018_v35  ;;  %v728_v35 = vld [vmem:[#allocation2 + $0x428] sm:$0xff] }
  0xbf   :  { %475 = vmatmul.f32.vlgmr.msrb.gmra.mxu1 %v2184_v9  ;;  %545 = vmatmul.f32.vlgmr.msrb.gmra.mxu2 %v2184_v9 }
  0xc0   :  { %615 = vmatmul.f32.vlgmr.msrb.gmra.mxu3 %v2184_v9  ;;  %685 = vmatmul.f32.vlgmr.msra.gmra.mxu0 %v2184_v9 }
  0xc1   :  { %745 = vmatpush.msra.mxu1 %v732_v22  ;;  %1668 = vset.pattern.permute.xlu1 %v2744_v3 }
  0xc2   :  { %1018 = vmatpush.msrb.mxu0 %v2025_v39  ;;  %703 = vperm.xlu1 %1668, %v1967_v11   ;;  %v727_v39 = vld [vmem:[#allocation2 + $0x420] sm:$0xff] }
  0xc3   :  { %746 = vmatpush.msra.mxu1 %v731_v27  ;;  %1672 = vset.pattern.permute.xlu0 %v2746_v13  ;;  %v2805_v27 = vmov 2  }
  0xc4   :  { %1019 = vmatpush.msrb.mxu0 %v2031_v43  ;;  %769 = vperm.xlu0 %1672, %v2003_v25   ;;  %v726_v43 = vld [vmem:[#allocation2 + $0x418] sm:$0xff] }
  0xc5   :  { %747 = vmatpush.msra.mxu1 %v730_v31  ;;  %1663 = vset.pattern.permute.xlu2 %v2744_v3 }
  0xc6   :  { %711 = vperm.xlu2 %1663, %v1985_v16   ;;  %1020 = vmatpush.msrb.mxu0 %v2037_v48  ;;  %v2782_v16 = vmov 6   ;;  %v2783_v48 = vmov 0  }
  0xc7   :  { %478 = vmatmul.f32.gmra.mxu1 %v2220_v12  ;;  %548 = vmatmul.f32.gmra.mxu2 %v2220_v12 }
  0xc8   :  { %618 = vmatmul.f32.gmra.mxu3 %v2220_v12  ;;  %688 = vmatmul.f32.gmra.mxu0 %v2220_v12 }
  0xc9   :  { %748 = vmatpush.msra.mxu1 %v729_v55  ;;  %1021 = vmatpush.msrb.mxu0 %v2045_v52  ;;  %v724_v52 = vld [vmem:[#allocation2 + $0x408] sm:$0xff] }
  0xca   :  { %1670 = vset.pattern.permute.xlu1 %v2746_v13 }
  0xcb   :  { %749 = vmatpush.msra.mxu1 %v728_v35  ;;  %773 = vperm.xlu1 %1670, %v1967_v11  }
  0xcc   :  { %1674 = vset.pattern.permute.xlu0 %v2783_v48  ;;  %1022 = vmatpush.msrb.mxu0 %v2051_v56  ;;  %v59_v56 = vld [vmem:[%s2703_s4] sm:$0xff] }
  0xcd   :  { %750 = vmatpush.msra.mxu1 %v727_v39 }
  0xce   :  { %1665 = vset.pattern.permute.xlu2 %v2782_v16  ;;  %1023 = vmatpush.msrb.mxu0 %v2059_v60  ;;  %v2346_v60 = vpop.permute.xlu2 %291 }
  0xcf   :  { %481 = vmatmul.f32.gmra.mxu1 %v2254_v34  ;;  %551 = vmatmul.f32.gmra.mxu2 %v2254_v34 }
  0xd0   :  { %621 = vmatmul.f32.gmra.mxu3 %v2254_v34  ;;  %691 = vmatmul.f32.gmra.mxu0 %v2254_v34 }
  0xd1   :  { %751 = vmatpush.msra.mxu1 %v726_v43  ;;  %633 = vperm.xlu2 %1665, %v1967_v11   ;;  %v723_v11 = vld [vmem:[#allocation2 + $0x400] sm:$0xff] }
  0xd2   :  { %1024 = vmatpush.msrb.mxu0 %v2065_v1  ;;  %v2788_v1 = vld [vmem:[#allocation9_spill] sm:$0xff] }
  0xd3   :  { %752 = vmatpush.msra.mxu1 %v725_v0  ;;  %1673 = vset.pattern.permute.xlu1 %v2783_v48 }
  0xd4   :  { %804 = vperm.xlu1 %1673, %v61_v7   ;;  %1025 = vmatpush.msrb.mxu0 %v2073_v5  ;;  %v2789_v5 = vld [vmem:[#allocation10_spill] sm:$0xff] }
  0xd5   :  { %753 = vmatpush.msra.mxu1 %v724_v52 }
  0xd6   :  { %1026 = vmatpush.msrb.mxu0 %v2079_v15  ;;  %v2790_v15 = vld [vmem:[#allocation11_spill] sm:$0xff] }
  0xd7   :  { %484 = vmatmul.f32.gmra.mxu1 %v2276_v46  ;;  %554 = vmatmul.f32.gmra.mxu2 %v2276_v46 }
  0xd8   :  { %624 = vmatmul.f32.gmra.mxu3 %v2276_v46  ;;  %694 = vmatmul.f32.gmra.mxu0 %v2276_v46 }
  0xd9   :  { %754 = vmatpush.msra.mxu1 %v723_v11  ;;  %629 = vperm.xlu2 %1665, %v2003_v25  }
  0xda   :  { %1027 = vmatpush.msrb.mxu0 %v2087_v24  ;;  %v2792_v24 = vld [vmem:[#allocation12_spill] sm:$0xff] }
  0xdb   :  { %1065 = vmatpush.msrb.mxu1 %v1978_v14  ;;  %v2350_v14 = vpop.permute.xlu1 %287 }
  0xdc   :  { %794 = vperm.xlu1 %1673, %v59_v56   ;;  %1224 = vmatpush.msra.mxu0 %v2093_v33  ;;  %v1616_v33 = vld [vmem:[%s2701_s2 + $0x30] sm:$0xff] }
  0xdd   :  { %1066 = vmatpush.msrb.mxu1 %v1990_v19  ;;  %v1615_v19 = vld [vmem:[%s2701_s2 + $0x28] sm:$0xff] }
  0xde   :  { %1225 = vmatpush.msra.mxu0 %v2101_v42  ;;  %v2793_v42 = vld [vmem:[#allocation13_spill] sm:$0xff] }
  0xdf   :  { %755 = vmatmul.f32.vlgmr.msra.gmra.mxu1 %v2184_v9  ;;  %v2801_v9 = vld [vmem:[#allocation23_spill] sm:$0xff] }
  0xe0   :  { %1067 = vmatpush.msrb.mxu1 %v1996_v23  ;;  %1226 = vmatpush.msra.mxu0 %v2111_v58  ;;  %v2366_v23 = vpop.permute.xlu2 %361  ;;  %v2794_v58 = vld [vmem:[#allocation14_spill] sm:$0xff] }
  0xe1   :  { %1669 = vset.pattern.permute.xlu2 %v2746_v13 }
  0xe2   :  { %1068 = vmatpush.msrb.mxu1 %v2008_v28  ;;  %777 = vperm.xlu2 %1669, %v1955_v8   ;;  %v62_v8 = vld [vmem:[%s2703_s4 + $0x18] sm:$0xff] }
  0xe3   :  { %1227 = vmatpush.msra.mxu0 %v2119_v4  ;;  %v2373_v25 = vpop.permute.xlu1 %283  ;;  %v1617_v28 = vld [vmem:[%s2701_s2 + $0x38] sm:$0xff]  ;;  %v2795_v4 = vld [vmem:[#allocation15_spill] sm:$0xff] }
  0xe4   :  { %1069 = vmatpush.msrb.mxu1 %v2014_v32  ;;  %922 = vperm.xlu1 %1673, %v1615_v19   ;;  %v60_v32 = vld [vmem:[%s2703_s4 + $0x8] sm:$0xff]  ;;  %v2806_v19 = vmov 3  }
  0xe5   :  { %1228 = vmatpush.msra.mxu0 %v2128_v30 }
  0xe6   :  { %1070 = vmatpush.msrb.mxu1 %v2020_v36 }
  0xe7   :  { %758 = vmatmul.f32.gmra.mxu1 %v2220_v12  ;;  %1229 = vmatpush.msra.mxu0 %v2137_v63  ;;  %v2796_v63 = vld [vmem:[#allocation16_spill] sm:$0xff] }
  0xe8   :  { %1071 = vmatpush.msrb.mxu1 %v2027_v40  ;;  %v2391_v36 = vpop.permute.xlu2 %357 }
  0xe9   :  { %1230 = vmatpush.msra.mxu0 %v2147_v21  ;;  %v2431_v21 = vld [vmem:[%s2702_s3 + $0x20] sm:$0xff] }
  0xea   :  { %1072 = vmatpush.msrb.mxu1 %v2034_v44  ;;  %1671 = vset.pattern.permute.xlu2 %v2783_v48  ;;  %v2399_v44 = vld [vmem:[%s2702_s3 + $0x38] sm:$0xff] }
  0xeb   :  { %809 = vperm.xlu2 %1671, %v62_v8   ;;  %1231 = vmatpush.msra.mxu0 %v2154_v50  ;;  %v211_v40 = vpop.permute.xlu1 %210  ;;  %2784 = vst [vmem:[#allocation32_spill] sm:$0xff] %v2399_v44  ;;  %v2798_v50 = vld [vmem:[#allocation17_spill] sm:$0xff] }
  0xec   :  { %1073 = vmatpush.msrb.mxu1 %v2041_v49  ;;  %932 = vperm.xlu1 %1673, %v1617_v28   ;;  %v2785_v49 = vld [vmem:[#allocation22_spill] sm:$0xff] }
  0xed   :  { %1232 = vmatpush.msra.mxu0 %v2165_v41  ;;  %2797 = vst [vmem:[#allocation22_spill] sm:$0xff] %v2431_v21  ;;  %v2799_v41 = vld [vmem:[#allocation18_spill] sm:$0xff] }
  0xee   :  { %1074 = vmatpush.msrb.mxu1 %v2047_v53  ;;  %v64_v53 = vld [vmem:[%s2705_s6] sm:$0xff] }
  0xef   :  { %761 = vmatmul.f32.gmra.mxu1 %v2254_v34  ;;  %1233 = vmatpush.msra.mxu0 %v2173_v10  ;;  %v2800_v10 = vld [vmem:[#allocation20_spill] sm:$0xff]  ;;  %v221_v34 = vpop.permute.xlu0 %220 }
  0xf0   :  { %1075 = vmatpush.msrb.mxu1 %v2055_v57  ;;  %v2786_v57 = vld [vmem:[#allocation8_spill] sm:$0xff] }
  0xf1   :  { %1234 = vmatpush.msra.mxu0 %v2189_v62 }
  0xf2   :  { %1076 = vmatpush.msrb.mxu1 %v2061_v61  ;;  %v2787_v61 = vld [vmem:[#allocation25_spill] sm:$0xff] }
  0xf3   :  { %799 = vperm.xlu2 %1671, %v60_v32   ;;  %1235 = vmatpush.msra.mxu0 %v2785_v49 }
  0xf4   :  { %1077 = vmatpush.msrb.mxu1 %v2067_v2  ;;  %1058 = vperm.xlu1 %1673, %v2399_v44   ;;  %v280_v2 = vpop.permute.xlu2 %279 }
  0xf5   :  { %1236 = vmatpush.msra.mxu0 %v2787_v61 }
  0xf6   :  { %1078 = vmatpush.msrb.mxu1 %v2075_v6  ;;  %v354_v6 = vpop.permute.xlu1 %353 }
  0xf7   :  { %764 = vmatmul.f32.gmra.mxu1 %v2276_v46  ;;  %1237 = vmatpush.msra.mxu0 %v2234_v47  ;;  %v2802_v46 = vld [vmem:[#allocation26_spill] sm:$0xff]  ;;  %v2803_v47 = vld [vmem:[#allocation28_spill] sm:$0xff]  ;;  %v216_v55 = vpop.permute.xlu0 %215 }
  0xf8   :  { %1079 = vmatpush.msrb.mxu1 %v2083_v17  ;;  %v2791_v17 = vmov 1  }
  0xf9   :  { %1238 = vmatpush.msra.mxu0 %v2243_v29 }
  0xfa   :  { %1080 = vmatpush.msrb.mxu1 %v2786_v57 }
  0xfb   :  { %854 = vperm.xlu2 %1671, %v64_v53   ;;  %1239 = vmatpush.msra.mxu0 %v2261_v54  ;;  %v2804_v54 = vld [vmem:[#allocation30_spill] sm:$0xff] }
  0xfc   :  { %1277 = vmatpush.msra.mxu1 %v2788_v1  ;;  %1676 = vset.pattern.permute.xlu1 %v2791_v17  ;;  %v2424_v62 = vpop.permute.xlu2 %427 }
  0xfe   :  { %1278 = vmatpush.msra.mxu1 %v2789_v5  ;;  %v350_v30 = vpop.permute.xlu1 %349 }
  0xff   :  { %v2460_v28 = vpop.permute.xlu0 %501 }
 0x100   :  { %1279 = vmatpush.msra.mxu1 %v2790_v15 }
 0x102   :  { %1280 = vmatpush.msra.mxu1 %v2792_v24 }
 0x103   :  { %927 = vperm.xlu2 %1671, %v1616_v33  }
 0x104   :  { %1281 = vmatpush.msra.mxu1 %v2793_v42  ;;  %v2437_v29 = vpop.permute.xlu2 %423 }
 0x106   :  { %1282 = vmatpush.msra.mxu1 %v2794_v58  ;;  %v2440_v12 = vpop.permute.xlu1 %497 }
 0x107   :  { %v2466_v42 = vpop.permute.xlu0 %431 }
 0x108   :  { %1283 = vmatpush.msra.mxu1 %v2795_v4 }
 0x10a   :  { %1284 = vmatpush.msra.mxu1 %v2796_v63 }
 0x10b   :  { %1043 = vperm.xlu2 %1671, %v2431_v21  }
 0x10c   :  { %1285 = vmatpush.msra.mxu1 %v2798_v50  ;;  %v2448_v37 = vpop.permute.xlu2 %571 }
 0x10e   :  { %1286 = vmatpush.msra.mxu1 %v2799_v41  ;;  %v494_v22 = vpop.permute.xlu1 %493 }
 0x10f   :  { %v420_v41 = vpop.permute.xlu0 %419 }
 0x110   :  { %1287 = vmatpush.msra.mxu1 %v2800_v10 }
 0x112   :  { %1288 = vmatpush.msra.mxu1 %v2801_v9 }
 0x113   :  { %1675 = vset.pattern.permute.xlu2 %v2791_v17 }
 0x114   :  { %1289 = vmatpush.msra.mxu1 %v2802_v46  ;;  %1107 = vperm.xlu2 %1675, %v2399_v44   ;;  %v2452_v7 = vpop.permute.xlu2 %567 }
 0x116   :  { %1290 = vmatpush.msra.mxu1 %v2803_v47  ;;  %v2456_v56 = vpop.permute.xlu1 %641 }
 0x117   :  { %v564_v46 = vpop.permute.xlu0 %563 }
 0x118   :  { %1291 = vmatpush.msra.mxu1 %v2804_v54 }
 0x11a   :  { %1292 = vmatpush.msra.mxu1 %v2265_v26 }
 0x11c   :  { %v196_v59 = vpop.f32.mrf.mxu1  ;;  %1677 = vset.pattern.permute.xlu2 %v2805_v27 }
 0x11d   :  { %v228_v18 = vmul.f32 %v211_v40, %v196_v59  ;;  %1160 = vperm.xlu2 %1677, %v2399_v44   ;;  %v406_v26 = vpop.f32.mrf.mxu0 }
 0x11e   :  { %v2464_v15 = vpop.permute.xlu1 %637  ;;  %v434_v16 = vmul.f32 %v420_v41, %v406_v26 }
 0x122   :  { %v266_v31 = vpop.f32.mrf.mxu2 }
 0x123   :  { %v294_v35 = vmul.f32 %v280_v2, %v266_v31  ;;  %v336_v39 = vpop.f32.mrf.mxu3  ;;  %v490_v2 = vpop.permute.xlu2 %489 }
 0x124   :  { %v199_v43 = vpop.f32.mrf.mxu1  ;;  %v364_v52 = vmul.f32 %v350_v30, %v336_v39 }
 0x125   :  { %v298_v0 = vadd.f32 %v294_v35, %v228_v18  ;;  %1680 = vset.pattern.permute.xlu2 %v2806_v19  ;;  %v229_v32 = vmul.f32 %v216_v55, %v199_v43  ;;  %v409_v5 = vpop.f32.mrf.mxu0  ;;  %v2472_v35 = vpop.permute.xlu0 %707 }
 0x126   :  { %1213 = vperm.xlu2 %1680, %v2399_v44   ;;  %v560_v63 = vpop.permute.xlu1 %559 }
 0x127   :  { %v2454_v11 = vadd.f32 %v364_v52, %v298_v0 }
 0x12a   :  { %v269_v8 = vpop.f32.mrf.mxu2 }
 0x12b   :  { %v295_v40 = vmul.f32 %v2373_v25, %v269_v8  ;;  %v339_v49 = vpop.f32.mrf.mxu3  ;;  %v2468_v4 = vpop.permute.xlu2 %711 }
 0x12c   :  { %v202_v53 = vpop.f32.mrf.mxu1  ;;  %v365_v61 = vmul.f32 %v354_v6, %v339_v49  ;;  %v435_v49 = vmul.f32 %v2437_v29, %v409_v5  ;;  %v438_v29 = vadd.f32 %v434_v16, %v2454_v11 }
 0x12d   :  { %v299_v57 = vadd.f32 %v295_v40, %v229_v32  ;;  %v412_v25 = vpop.f32.mrf.mxu0  ;;  %v230_v32 = vmul.f32 %v221_v34, %v202_v53  ;;  %v700_v19 = vpop.permute.xlu0 %699 }
 0x12e   :  { %1682 = vset.pattern.permute.xlu2 %v2805_v27  ;;  %v2470_v54 = vpop.permute.xlu1 %781 }
 0x12f   :  { %v369_v1 = vadd.f32 %v365_v61, %v299_v57 }
 0x131   :  { %v439_v13 = vadd.f32 %v435_v49, %v369_v1  ;;  %v436_v1 = vmul.f32 %v2424_v62, %v412_v25 }
 0x132   :  { %v272_v24 = vpop.f32.mrf.mxu2 }
 0x133   :  { %v342_v58 = vpop.f32.mrf.mxu3  ;;  %v634_v9 = vpop.permute.xlu2 %633  ;;  %v296_v8 = vmul.f32 %v2350_v14, %v272_v24 }
 0x134   :  { %v205_v33 = vpop.f32.mrf.mxu1  ;;  %v366_v44 = vmul.f32 %v2391_v36, %v342_v58 }
 0x135   :  { %v415_v47 = vpop.f32.mrf.mxu0  ;;  %v300_v3 = vadd.f32 %v296_v8, %v230_v32  ;;  %v231_v24 = vmul.f32 %v2327_v38, %v205_v33 }
 0x136   :  { %v704_v43 = vpop.permute.xlu1 %703 }
 0x137   :  { %v370_v34 = vadd.f32 %v366_v44, %v300_v3 }
 0x13a   :  { %v275_v50 = vpop.f32.mrf.mxu2 }
 0x13b   :  { %v345_v6 = vpop.f32.mrf.mxu3  ;;  %v630_v55 = vpop.permute.xlu2 %629  ;;  %v297_v53 = vmul.f32 %v2346_v60, %v275_v50  ;;  %v437_v50 = vmul.f32 %v2466_v42, %v415_v47 }
 0x13c   :  { %v476_v30 = vpop.f32.mrf.mxu1  ;;  %v367_v16 = vmul.f32 %v2366_v23, %v345_v6 }
 0x13d   :  { %v686_v39 = vpop.f32.mrf.mxu0  ;;  %v504_v51 = vmul.f32 %v490_v2, %v476_v30  ;;  %v301_v2 = vadd.f32 %v297_v53, %v231_v24 }
 0x13e   :  { %v774_v48 = vpop.permute.xlu1 %773 }
 0x13f   :  { %v508_v26 = vadd.f32 %v504_v51, %v438_v29  ;;  %v371_v51 = vadd.f32 %v367_v16, %v301_v2 }
 0x142   :  { %v546_v59 = vpop.f32.mrf.mxu2 }
 0x143   :  { %v616_v31 = vpop.f32.mrf.mxu3  ;;  %v2475_v40 = vpop.permute.xlu2 %777 }
 0x144   :  { %v479_v10 = vpop.f32.mrf.mxu1  ;;  %v644_v11 = vmul.f32 %v630_v55, %v616_v31 }
 0x145   :  { %v505_v57 = vmul.f32 %v494_v22, %v479_v10  ;;  %v689_v17 = vpop.f32.mrf.mxu0  ;;  %v574_v22 = vmul.f32 %v560_v63, %v546_v59 }
 0x146   :  { %v715_v62 = vmul.f32 %v704_v43, %v689_v17  ;;  %v805_v25 = vpop.permute.xlu1 %804  ;;  %v441_v17 = vadd.f32 %v437_v50, %v371_v51 }
 0x147   :  { %v509_v27 = vadd.f32 %v505_v57, %v439_v13  ;;  %v578_v30 = vadd.f32 %v574_v22, %v508_v26  ;;  %v440_v13 = vadd.f32 %v436_v1, %v370_v34 }
 0x149   :  { %v648_v33 = vadd.f32 %v644_v11, %v578_v30 }
 0x14a   :  { %v549_v0 = vpop.f32.mrf.mxu2 }
 0x14b   :  { %v619_v61 = vpop.f32.mrf.mxu3  ;;  %v575_v45 = vmul.f32 %v564_v46, %v549_v0  ;;  %v810_v3 = vpop.permute.xlu2 %809 }
 0x14c   :  { %v482_v18 = vpop.f32.mrf.mxu1  ;;  %v645_v58 = vmul.f32 %v634_v9, %v619_v61 }
 0x14d   :  { %v579_v5 = vadd.f32 %v575_v45, %v509_v27  ;;  %v506_v36 = vmul.f32 %v2440_v12, %v482_v18  ;;  %v770_v27 = vpop.permute.xlu0 %769  ;;  %v692_v10 = vpop.f32.mrf.mxu0 }
 0x14e   :  { %v716_v43 = vmul.f32 %v2472_v35, %v692_v10 }
 0x14f   :  { %v649_v44 = vadd.f32 %v645_v58, %v579_v5  ;;  %v510_v45 = vadd.f32 %v506_v36, %v440_v13 }
 0x152   :  { %v552_v21 = vpop.f32.mrf.mxu2 }
 0x153   :  { %v576_v41 = vmul.f32 %v2452_v7, %v552_v21  ;;  %v622_v60 = vpop.f32.mrf.mxu3  ;;  %v719_v21 = vadd.f32 %v715_v62, %v649_v44  ;;  %v714_v7 = vmul.f32 %v700_v19, %v686_v39  ;;  %v800_v0 = vpop.permute.xlu2 %799 }
 0x154   :  { %v485_v52 = vpop.f32.mrf.mxu1  ;;  %v646_v46 = vmul.f32 %v2464_v15, %v622_v60 }
 0x155   :  { %v580_v12 = vadd.f32 %v576_v41, %v510_v45  ;;  %v507_v23 = vmul.f32 %v2460_v28, %v485_v52  ;;  %v718_v55 = vadd.f32 %v714_v7, %v648_v33  ;;  %v795_v28 = vpop.permute.xlu1 %794  ;;  %v695_v61 = vpop.f32.mrf.mxu0 }
 0x156   :  { %v717_v35 = vmul.f32 %v2468_v4, %v695_v61  ;;  %v1756_v61 = vld [vmem:[#allocation2 + $0x370] sm:$0xff] }
 0x157   :  { %v650_v18 = vadd.f32 %v646_v46, %v580_v12 }
 0x159   :  { %v720_v39 = vadd.f32 %v716_v43, %v650_v18  ;;  %v63_v18 = vld [vmem:[%s2704_s5] sm:$0xff] }
 0x15a   :  { %v555_v9 = vpop.f32.mrf.mxu2  ;;  %v1742_v43 = vld [vmem:[#allocation2 + $0x160] sm:$0xff] }
 0x15b   :  { %v577_v31 = vmul.f32 %v2448_v37, %v555_v9  ;;  %v625_v47 = vpop.f32.mrf.mxu3 }
 0x15c   :  { %v756_v14 = vpop.f32.mrf.mxu1  ;;  %v647_v52 = vmul.f32 %v2456_v56, %v625_v47  ;;  %v1746_v47 = vld [vmem:[#allocation2 + $0x140] sm:$0xff] }
 0x15d   :  { %v784_v6 = vmul.f32 %v770_v27, %v756_v14 }
 0x15f   :  { %v788_v42 = vadd.f32 %v784_v6, %v718_v55  ;;  %v1741_v55 = vld [vmem:[#allocation2 + $0x168] sm:$0xff] }
 0x161   :  { %v812_v49 = vadd.f32 %v795_v28, %v788_v42  ;;  %v1745_v42 = vld [vmem:[#allocation2 + $0x148] sm:$0xff]  ;;  %v1752_v28 = vld [vmem:[#allocation2 + $0x110] sm:$0xff] }
 0x163   :  { %v820_v53 = vmul.f32 %v812_v49, %v812_v49  ;;  %v816_v6 = vmul.f32 0.5, %v812_v49 }
 0x164   :  { %v759_v38 = vpop.f32.mrf.mxu1 }
 0x165   :  { %v785_v63 = vmul.f32 %v774_v48, %v759_v38  ;;  %v511_v48 = vadd.f32 %v507_v23, %v441_v17  ;;  %v1739_v17 = vld [vmem:[#allocation2 + $0x178] sm:$0xff] }
 0x167   :  { %v789_v59 = vadd.f32 %v785_v63, %v719_v21  ;;  %v581_v19 = vadd.f32 %v577_v31, %v511_v48  ;;  %v1740_v31 = vld [vmem:[#allocation2 + $0x170] sm:$0xff]  ;;  %v1743_v48 = vld [vmem:[#allocation2 + $0x158] sm:$0xff] }
 0x169   :  { %v813_v8 = vadd.f32 %v800_v0, %v789_v59  ;;  %v651_v14 = vadd.f32 %v647_v52, %v581_v19  ;;  %v1744_v0 = vld [vmem:[#allocation2 + $0x150] sm:$0xff]  ;;  %v1749_v19 = vld [vmem:[#allocation2 + $0x128] sm:$0xff] }
 0x16a   :  { %v1753_v52 = vld [vmem:[#allocation2 + $0x108] sm:$0xff] }
 0x16b   :  { %v821_v37 = vmul.f32 %v813_v8, %v813_v8  ;;  %v721_v1 = vadd.f32 %v717_v35, %v651_v14  ;;  %v817_v7 = vmul.f32 0.5, %v813_v8  ;;  %v1758_v14 = vld [vmem:[#allocation2 + $0x360] sm:$0xff]  ;;  %v1760_v35 = vld [vmem:[#allocation2 + $0x350] sm:$0xff] }
 0x16c   :  { %v762_v32 = vpop.f32.mrf.mxu1 }
 0x16d   :  { %v786_v15 = vmul.f32 %v2475_v40, %v762_v32  ;;  %v825_v5 = vmul.f32 %v821_v37, %v813_v8  ;;  %v824_v40 = vmul.f32 %v820_v53, %v812_v49  ;;  %v1748_v32 = vld [vmem:[#allocation2 + $0x130] sm:$0xff]  ;;  %v1757_v37 = vld [vmem:[#allocation2 + $0x368] sm:$0xff] }
 0x16e   :  { %v1761_v53 = vld [vmem:[#allocation2 + $0x348] sm:$0xff] }
 0x16f   :  { %v790_v57 = vadd.f32 %v786_v15, %v720_v39  ;;  %v829_v56 = vmul.f32 0.044715, %v825_v5  ;;  %v828_v30 = vmul.f32 0.044715, %v824_v40  ;;  %v1750_v39 = vld [vmem:[#allocation2 + $0x120] sm:$0xff]  ;;  %v1751_v15 = vld [vmem:[#allocation2 + $0x118] sm:$0xff] }
 0x170   :  { %v2807_v5 = vld [vmem:[#allocation19_spill] sm:$0xff]  ;;  %v2811_v40 = vld [vmem:[#allocation29_spill] sm:$0xff] }
 0x171   :  { %v814_v34 = vadd.f32 %v805_v25, %v790_v57  ;;  %v833_v44 = vadd.f32 %v829_v56, %v813_v8  ;;  %v832_v16 = vadd.f32 %v828_v30, %v812_v49  ;;  %v1747_v8 = vld [vmem:[#allocation2 + $0x138] sm:$0xff]  ;;  %v1754_v49 = vld [vmem:[#allocation2 + $0x100] sm:$0xff]  ;;  %v855_v56 = vpop.permute.xlu2 %854 }
 0x172   :  { %v1755_v57 = vld [vmem:[#allocation2 + $0x378] sm:$0xff] }
 0x173   :  { %v822_v29 = vmul.f32 %v814_v34, %v814_v34  ;;  %v837_v45 = vmul.f32 0.7978846, %v833_v44  ;;  %v836_v25 = vmul.f32 0.7978846, %v832_v16  ;;  %v818_v10 = vmul.f32 0.5, %v814_v34  ;;  %v2515_v44 = vld [vmem:[%s2702_s3 + $0x28] sm:$0xff] }
 0x174   :  { %v765_v22 = vpop.f32.mrf.mxu1  ;;  %1152 = vperm.xlu2 %1682, %v2515_v44  }
 0x175   :  { %v787_v24 = vmul.f32 %v2470_v54, %v765_v22  ;;  %v826_v26 = vmul.f32 %v822_v29, %v814_v34  ;;  %v1762_v29 = vld [vmem:[#allocation2 + $0x340] sm:$0xff]  ;;  %v1763_v22 = vld [vmem:[#allocation2 + $0x338] sm:$0xff] }
 0x177   :  { %v791_v36 = vadd.f32 %v787_v24, %v721_v1  ;;  %v830_v58 = vmul.f32 0.044715, %v826_v26  ;;  %v2808_v1 = vld [vmem:[#allocation21_spill] sm:$0xff]  ;;  %v2809_v24 = vld [vmem:[#allocation24_spill] sm:$0xff]  ;;  %v2810_v26 = vld [vmem:[#allocation27_spill] sm:$0xff] }
 0x179   :  { %v815_v2 = vadd.f32 %v810_v3, %v791_v36  ;;  %v834_v41 = vadd.f32 %v830_v58, %v814_v34  ;;  %v1759_v34 = vld [vmem:[#allocation2 + $0x358] sm:$0xff]  ;;  %v2812_v36 = vld [vmem:[#allocation31_spill] sm:$0xff] }
 0x17a   :  { %v1614_v58 = vld [vmem:[%s2701_s2 + $0x20] sm:$0xff] }
 0x17b   :  { %v823_v13 = vmul.f32 %v815_v2, %v815_v2  ;;  %v838_v11 = vmul.f32 0.7978846, %v834_v41  ;;  %v819_v3 = vmul.f32 0.5, %v815_v2  ;;  %917 = vperm.xlu0 %1674, %v1614_v58  }
 0x17d   :  { %v827_v60 = vmul.f32 %v823_v13, %v815_v2  ;;  %1711 = vtanh.f32 %v838_v11  ;;  %v1764_v13 = vld [vmem:[%s2699_s0] sm:$0xff]  ;;  %v2522_v11 = vld [vmem:[%s2702_s3 + $0x30] sm:$0xff] }
 0x17e   :  { %1713 = vtanh.f32 %v837_v45  ;;  %1103 = vperm.xlu1 %1676, %v2522_v11  }
 0x17f   :  { %v831_v4 = vmul.f32 0.044715, %v827_v60 }
 0x181   :  { %v835_v27 = vadd.f32 %v831_v4, %v815_v2 }
 0x183   :  { %v839_v62 = vmul.f32 0.7978846, %v835_v27  ;;  %v1712_v54 = vpop.eup %1711  ;;  %1048 = vperm.xlu0 %1674, %v2515_v44   ;;  %v2813_v27 = vld [vmem:[#allocation22_spill] sm:$0xff] }
 0x184   :  { %v1714_v38 = vpop.eup %1713  ;;  %v846_v12 = vadd.f32 1.0, %v1712_v54  ;;  %1148 = vperm.xlu2 %1682, %v2813_v27  }
 0x185   :  { %1715 = vtanh.f32 %v839_v62  ;;  %v845_v9 = vadd.f32 1.0, %v1714_v38  ;;  %v2814_v62 = vmov 2  }
 0x186   :  { %1717 = vtanh.f32 %v836_v25  ;;  %v850_v21 = vmul.f32 %v846_v12, %v818_v10  ;;  %1679 = vset.pattern.permute.xlu1 %v2814_v62  ;;  %v2815_v25 = vmov 1   ;;  %v1610_v12 = vld [vmem:[%s2700_s1 + $0x20] sm:$0xff]  ;;  %v1766_v10 = vld [vmem:[#allocation2 + $0x1f0] sm:$0xff] }
 0x187   :  { %v849_v23 = vmul.f32 %v845_v9, %v817_v7  ;;  %1156 = vperm.xlu1 %1679, %v2522_v11   ;;  %v1611_v9 = vld [vmem:[%s2700_s1 + $0x28] sm:$0xff]  ;;  %v1768_v7 = vld [vmem:[#allocation2 + $0x1e0] sm:$0xff] }
 0x18b   :  { %v1716_v51 = vpop.eup %1715  ;;  %1053 = vperm.xlu0 %1674, %v2522_v11  }
 0x18c   :  { %v847_v33 = vadd.f32 1.0, %v1716_v51  ;;  %v1718_v63 = vpop.eup %1717 }
 0x18d   :  { %v844_v46 = vadd.f32 1.0, %v1718_v63  ;;  %v1765_v63 = vld [vmem:[#allocation2 + $0x1f8] sm:$0xff] }
 0x18e   :  { %v851_v50 = vmul.f32 %v847_v33, %v819_v3  ;;  %v2816_v3 = vmov 4  }
 0x18f   :  { %v848_v59 = vmul.f32 %v844_v46, %v816_v6  ;;  %1686 = vset.pattern.permute.xlu2 %v2816_v3  ;;  %1681 = vset.pattern.permute.xlu1 %v2815_v25  ;;  %v1769_v46 = vld [vmem:[#allocation2 + $0x1d8] sm:$0xff]  ;;  %v2818_v6 = vld [vmem:[#allocation32_spill] sm:$0xff] }
 0x190   :  { %873 = vmatpush.msra.mxu2 %v851_v50  ;;  %1262 = vperm.xlu2 %1686, %v2522_v11   ;;  %v2817_v50 = vmov 3  }
 0x191   :  { %1095 = vperm.xlu1 %1681, %v2813_v27  }
 0x192   :  { %874 = vmatpush.msra.mxu2 %v850_v21  ;;  %v1767_v21 = vld [vmem:[#allocation2 + $0x1e8] sm:$0xff] }
 0x193   :  { %1678 = vset.pattern.permute.xlu0 %v2815_v25  ;;  %v928_v25 = vpop.permute.xlu2 %927 }
 0x194   :  { %875 = vmatpush.msra.mxu2 %v849_v23  ;;  %1099 = vperm.xlu0 %1678, %v2515_v44   ;;  %v1770_v23 = vld [vmem:[#allocation2 + $0x1d0] sm:$0xff] }
 0x196   :  { %876 = vmatpush.msra.mxu2 %v848_v59  ;;  %v2819_v59 = vmov 5  }
 0x197   :  { %1609 = vmatmul.msk.f32.vlgmr.msra.gmra.mxu2 %vm857_vm1, %v63_v18  ;;  %v1612_v18 = vld [vmem:[%s2700_s1 + $0x30] sm:$0xff] }
 0x198   :  { %1118 = vmatpush.msrb.mxu2 %v1739_v17  ;;  %1258 = vperm.xlu2 %1686, %v2515_v44   ;;  %v1771_v17 = vld [vmem:[#allocation2 + $0x1c8] sm:$0xff] }
 0x199   :  { %1684 = vset.pattern.permute.xlu1 %v2816_v3 }
 0x19a   :  { %1119 = vmatpush.msrb.mxu2 %v1740_v31  ;;  %1266 = vperm.xlu1 %1684, %v2818_v6   ;;  %v2820_v31 = vmov 6  }
 0x19c   :  { %1120 = vmatpush.msrb.mxu2 %v1741_v55  ;;  %1683 = vset.pattern.permute.xlu0 %v2817_v50  ;;  %v1772_v55 = vld [vmem:[#allocation2 + $0x1c0] sm:$0xff] }
 0x19d   :  { %1209 = vperm.xlu0 %1683, %v2522_v11  }
 0x19e   :  { %1121 = vmatpush.msrb.mxu2 %v1742_v43  ;;  %v1773_v43 = vld [vmem:[#allocation2 + $0x1b8] sm:$0xff] }
 0x1a0   :  { %1122 = vmatpush.msrb.mxu2 %v1743_v48  ;;  %1689 = vset.pattern.permute.xlu2 %v2820_v31  ;;  %v1774_v48 = vld [vmem:[#allocation2 + $0x1b0] sm:$0xff] }
 0x1a1   :  { %1372 = vperm.xlu2 %1689, %v2818_v6  }
 0x1a2   :  { %1123 = vmatpush.msrb.mxu2 %v1744_v0  ;;  %1685 = vset.pattern.permute.xlu1 %v2817_v50  ;;  %v1613_v0 = vld [vmem:[%s2700_s1 + $0x38] sm:$0xff] }
 0x1a3   :  { %1205 = vperm.xlu1 %1685, %v2515_v44  }
 0x1a4   :  { %1124 = vmatpush.msrb.mxu2 %v1745_v42  ;;  %v1775_v42 = vld [vmem:[#allocation2 + $0x1a8] sm:$0xff] }
 0x1a5   :  { %1687 = vset.pattern.permute.xlu0 %v2819_v59 }
 0x1a6   :  { %1125 = vmatpush.msrb.mxu2 %v1746_v47  ;;  %1319 = vperm.xlu0 %1687, %v2818_v6   ;;  %v1776_v47 = vld [vmem:[#allocation2 + $0x1a0] sm:$0xff] }
 0x1a8   :  { %1126 = vmatpush.msrb.mxu2 %v1747_v8  ;;  %v1777_v8 = vld [vmem:[#allocation2 + $0x198] sm:$0xff] }
 0x1a9   :  { %1368 = vperm.xlu2 %1689, %v2522_v11  }
 0x1aa   :  { %1127 = vmatpush.msrb.mxu2 %v1748_v32  ;;  %v1778_v32 = vld [vmem:[#allocation2 + $0x190] sm:$0xff] }
 0x1ab   :  { %1201 = vperm.xlu1 %1685, %v2813_v27  }
 0x1ac   :  { %1128 = vmatpush.msrb.mxu2 %v1749_v19  ;;  %v1779_v19 = vld [vmem:[#allocation2 + $0x188] sm:$0xff] }
 0x1ae   :  { %1129 = vmatpush.msrb.mxu2 %v1750_v39  ;;  %1690 = vset.pattern.permute.xlu0 %v2816_v3  ;;  %v1780_v39 = vld [vmem:[#allocation2 + $0x180] sm:$0xff] }
 0x1af   :  { %1254 = vperm.xlu0 %1690, %v2813_v27  }
 0x1b0   :  { %1130 = vmatpush.msrb.mxu2 %v1751_v15  ;;  %v1781_v15 = vld [vmem:[#allocation2 + $0x3f8] sm:$0xff] }
 0x1b1   :  { %1692 = vset.pattern.permute.xlu2 %v2819_v59 }
 0x1b2   :  { %1131 = vmatpush.msrb.mxu2 %v1752_v28  ;;  %v1782_v28 = vld [vmem:[#allocation2 + $0x3f0] sm:$0xff]  ;;  %1307 = vperm.xlu2 %1692, %v2813_v27  }
 0x1b3   :  { %1688 = vset.pattern.permute.xlu1 %v2819_v59  ;;  %v1797_v59 = vld [vmem:[#allocation2 + $0x478] sm:$0xff] }
 0x1b4   :  { %1132 = vmatpush.msrb.mxu2 %v1753_v52  ;;  %v1783_v52 = vld [vmem:[#allocation2 + $0x3e8] sm:$0xff]  ;;  %1315 = vperm.xlu1 %1688, %v2522_v11  }
 0x1b6   :  { %1133 = vmatpush.msrb.mxu2 %v1754_v49  ;;  %v1784_v49 = vld [vmem:[#allocation2 + $0x3e0] sm:$0xff] }
 0x1b7   :  { %1693 = vset.pattern.permute.xlu0 %v2820_v31 }
 0x1b8   :  { %1330 = vmatpush.msra.mxu2 %v1755_v57  ;;  %1364 = vperm.xlu0 %1693, %v2515_v44   ;;  %v1785_v57 = vld [vmem:[#allocation2 + $0x3d8] sm:$0xff] }
 0x1ba   :  { %1331 = vmatpush.msra.mxu2 %v1756_v61  ;;  %v2821_v61 = vmov 8  }
 0x1bb   :  { %1694 = vset.pattern.permute.xlu2 %v2821_v61 }
 0x1bc   :  { %1332 = vmatpush.msra.mxu2 %v1757_v37  ;;  %v1786_v37 = vld [vmem:[#allocation2 + $0x3d0] sm:$0xff]  ;;  %1478 = vperm.xlu2 %1694, %v2818_v6  }
 0x1bd   :  { %1311 = vperm.xlu1 %1688, %v2515_v44  }
 0x1be   :  { %1333 = vmatpush.msra.mxu2 %v1758_v14  ;;  %v1787_v14 = vld [vmem:[#allocation2 + $0x3c8] sm:$0xff] }
 0x1c0   :  { %1334 = vmatpush.msra.mxu2 %v1759_v34  ;;  %1697 = vset.pattern.permute.xlu0 %v2821_v61  ;;  %v1788_v34 = vld [vmem:[#allocation2 + $0x3c0] sm:$0xff] }
 0x1c1   :  { %1474 = vperm.xlu0 %1697, %v2522_v11  }
 0x1c2   :  { %1335 = vmatpush.msra.mxu2 %v1760_v35  ;;  %v1789_v35 = vld [vmem:[#allocation2 + $0x3b8] sm:$0xff] }
 0x1c4   :  { %1336 = vmatpush.msra.mxu2 %v1761_v53  ;;  %v2822_v53 = vmov 0  }
 0x1c6   :  { %1337 = vmatpush.msra.mxu2 %v1762_v29  ;;  %v1790_v29 = vld [vmem:[#allocation2 + $0x3b0] sm:$0xff] }
 0x1c8   :  { %1338 = vmatpush.msra.mxu2 %v1763_v22  ;;  %v2823_v22 = vmov 7  }
 0x1c9   :  { %1701 = vset.pattern.permute.xlu0 %v2822_v53  ;;  %1696 = vset.pattern.permute.xlu2 %v2823_v22 }
 0x1ca   :  { %1339 = vmatpush.msra.mxu2 %v2807_v5  ;;  %v1791_v5 = vld [vmem:[#allocation2 + $0x3a8] sm:$0xff]  ;;  %1417 = vperm.xlu2 %1696, %v2515_v44  }
 0x1cb   :  { %1691 = vset.pattern.permute.xlu1 %v2823_v22 }
 0x1cc   :  { %1340 = vmatpush.msra.mxu2 %v2808_v1  ;;  %v1792_v1 = vld [vmem:[#allocation2 + $0x3a0] sm:$0xff]  ;;  %1425 = vperm.xlu1 %1691, %v2818_v6  }
 0x1ce   :  { %1341 = vmatpush.msra.mxu2 %v2809_v24  ;;  %v1793_v24 = vld [vmem:[#allocation2 + $0x398] sm:$0xff] }
 0x1d0   :  { %1342 = vmatpush.msra.mxu2 %v2810_v26  ;;  %v1794_v26 = vld [vmem:[#allocation2 + $0x390] sm:$0xff] }
 0x1d2   :  { %1343 = vmatpush.msra.mxu2 %v2811_v40  ;;  %v1795_v40 = vld [vmem:[#allocation2 + $0x388] sm:$0xff]  ;;  %1699 = vset.pattern.permute.xlu2 %v2821_v61  ;;  %v1802_v61 = vld [vmem:[#allocation2 + $0x450] sm:$0xff] }
 0x1d3   :  { %1470 = vperm.xlu2 %1699, %v2515_v44   ;;  %v923_v44 = vpop.permute.xlu1 %922 }
 0x1d4   :  { %1344 = vmatpush.msra.mxu2 %v2812_v36  ;;  %v1796_v36 = vld [vmem:[#allocation2 + $0x380] sm:$0xff]  ;;  %1421 = vperm.xlu1 %1691, %v2522_v11  }
 0x1d6   :  { %1345 = vmatpush.msra.mxu2 %v2267_v20 }
 0x1db   :  { %1466 = vperm.xlu2 %1699, %v2813_v27  }
 0x1dc   :  { %1695 = vset.pattern.permute.xlu1 %v2820_v31 }
 0x1dd   :  { %1360 = vperm.xlu1 %1695, %v2813_v27  }
 0x1e3   :  { %1702 = vset.pattern.permute.xlu2 %v2822_v53 }
 0x1e5   :  { %1698 = vset.pattern.permute.xlu1 %v2823_v22  ;;  %v1805_v22 = vld [vmem:[#allocation2 + $0x438] sm:$0xff] }
 0x1e6   :  { %1413 = vperm.xlu1 %1698, %v2813_v27  }
 0x1ed   :  { %v918_v58 = vpop.permute.xlu0 %917 }
 0x1ee   :  { %1700 = vset.pattern.permute.xlu1 %v2822_v53  ;;  %v1804_v53 = vld [vmem:[#allocation2 + $0x440] sm:$0xff] }
 0x21a   :  { %v878_v2 = vpop.f32.mrf.mxu2 }
 0x21b   :  { %v879_v30 = vadd.f32 %v878_v2, %v855_v56 }
 0x21d   :  { %v881_v41 = vadd.f32 %v1764_v13, %v879_v30 }
 0x21f   :  { %v883_v20 = vmul.f32 %v881_v41, %v881_v41  ;;  %v882_v38 = vmul.f32 0.5, %v881_v41 }
 0x221   :  { %v884_v60 = vmul.f32 %v883_v20, %v881_v41 }
 0x223   :  { %v885_v16 = vmul.f32 0.044715, %v884_v60 }
 0x225   :  { %v886_v4 = vadd.f32 %v885_v16, %v881_v41 }
 0x227   :  { %v887_v45 = vmul.f32 0.7978846, %v886_v4 }
 0x229   :  { %1719 = vtanh.f32 %v887_v45 }
 0x22f   :  { %v1720_v54 = vpop.eup %1719 }
 0x230   :  { %v889_v51 = vadd.f32 1.0, %v1720_v54 }
 0x232   :  { %v2533_v33 = vmul.f32 %v889_v51, %v882_v38 }
 0x234   :  { %962 = vmatpush.msra.mxu3 %v2533_v33 }
 0x235   :  { %1628 = vmatmul.msk.f32.vlgmr.msra.gmra.mxu3 %vm85_vm0, %v1610_v12 }
 0x236   :  { %1171 = vmatpush.msrb.mxu3 %v1765_v63 }
 0x238   :  { %1172 = vmatpush.msrb.mxu3 %v1766_v10 }
 0x23a   :  { %1173 = vmatpush.msrb.mxu3 %v1767_v21 }
 0x23c   :  { %1174 = vmatpush.msrb.mxu3 %v1768_v7  ;;  %v933_v7 = vpop.permute.xlu1 %932 }
 0x23d   :  { %1629 = vmatmul.msk.f32.gmra.mxu3 %vm85_vm0, %v1611_v9 }
 0x23e   :  { %1175 = vmatpush.msrb.mxu3 %v1769_v46 }
 0x240   :  { %1176 = vmatpush.msrb.mxu3 %v1770_v23 }
 0x242   :  { %1177 = vmatpush.msrb.mxu3 %v1771_v17 }
 0x244   :  { %1178 = vmatpush.msrb.mxu3 %v1772_v55 }
 0x245   :  { %1630 = vmatmul.msk.f32.gmra.mxu3 %vm85_vm0, %v1612_v18 }
 0x246   :  { %1179 = vmatpush.msrb.mxu3 %v1773_v43 }
 0x248   :  { %1180 = vmatpush.msrb.mxu3 %v1774_v48  ;;  %v1798_v48 = vld [vmem:[#allocation2 + $0x470] sm:$0xff] }
 0x24a   :  { %1181 = vmatpush.msrb.mxu3 %v1775_v42 }
 0x24c   :  { %1182 = vmatpush.msrb.mxu3 %v1776_v47  ;;  %v1799_v47 = vld [vmem:[#allocation2 + $0x468] sm:$0xff] }
 0x24d   :  { %1631 = vmatmul.msk.f32.gmra.mxu3 %vm85_vm0, %v1613_v0 }
 0x24e   :  { %1183 = vmatpush.msrb.mxu3 %v1777_v8 }
 0x250   :  { %1184 = vmatpush.msrb.mxu3 %v1778_v32 }
 0x252   :  { %1185 = vmatpush.msrb.mxu3 %v1779_v19  ;;  %v1800_v19 = vld [vmem:[#allocation2 + $0x460] sm:$0xff] }
 0x254   :  { %1186 = vmatpush.msrb.mxu3 %v1780_v39 }
 0x256   :  { %1383 = vmatpush.msra.mxu3 %v1781_v15 }
 0x258   :  { %1384 = vmatpush.msra.mxu3 %v1782_v28 }
 0x25a   :  { %1385 = vmatpush.msra.mxu3 %v1783_v52 }
 0x25c   :  { %1386 = vmatpush.msra.mxu3 %v1784_v49  ;;  %v1801_v49 = vld [vmem:[#allocation2 + $0x458] sm:$0xff] }
 0x25e   :  { %1387 = vmatpush.msra.mxu3 %v1785_v57 }
 0x260   :  { %1388 = vmatpush.msra.mxu3 %v1786_v37  ;;  %v1803_v37 = vld [vmem:[#allocation2 + $0x448] sm:$0xff] }
 0x262   :  { %1389 = vmatpush.msra.mxu3 %v1787_v14 }
 0x264   :  { %1390 = vmatpush.msra.mxu3 %v1788_v34 }
 0x266   :  { %1391 = vmatpush.msra.mxu3 %v1789_v35 }
 0x268   :  { %1392 = vmatpush.msra.mxu3 %v1790_v29 }
 0x26a   :  { %1393 = vmatpush.msra.mxu3 %v1791_v5  ;;  %v1806_v5 = vld [vmem:[#allocation2 + $0x430] sm:$0xff] }
 0x26c   :  { %1394 = vmatpush.msra.mxu3 %v1792_v1  ;;  %v1807_v1 = vld [vmem:[#allocation2 + $0x428] sm:$0xff] }
 0x26e   :  { %1395 = vmatpush.msra.mxu3 %v1793_v24  ;;  %v1808_v24 = vld [vmem:[#allocation2 + $0x420] sm:$0xff] }
 0x270   :  { %1396 = vmatpush.msra.mxu3 %v1794_v26  ;;  %v1809_v26 = vld [vmem:[#allocation2 + $0x418] sm:$0xff] }
 0x272   :  { %1397 = vmatpush.msra.mxu3 %v1795_v40  ;;  %v1810_v40 = vld [vmem:[#allocation2 + $0x410] sm:$0xff] }
 0x274   :  { %1398 = vmatpush.msra.mxu3 %v1796_v36  ;;  %v1811_v36 = vld [vmem:[#allocation2 + $0x408] sm:$0xff] }
 0x2b8   :  { %v964_v56 = vpop.f32.mrf.mxu3 }
 0x2b9   :  { %v965_v2 = vadd.f32 %v964_v56, %v918_v58  ;;  %v1625_v58 = vld [vmem:[%s2703_s4 + $0x38] sm:$0xff]  ;;  %v1812_v56 = vld [vmem:[#allocation2 + $0x400] sm:$0xff] }
 0x2ba   :  { %1506 = vperm.xlu1 %1700, %v1625_v58  }
 0x2bb   :  { %v980_v30 = vmul.f32 %v965_v2, %v965_v2  ;;  %v976_v63 = vmul.f32 0.5, %v965_v2 }
 0x2bd   :  { %v984_v13 = vmul.f32 %v980_v30, %v965_v2  ;;  %v1044_v30 = vpop.permute.xlu2 %1043 }
 0x2bf   :  { %v988_v41 = vmul.f32 0.044715, %v984_v13  ;;  %v1624_v13 = vld [vmem:[%s2703_s4 + $0x30] sm:$0xff] }
 0x2c0   :  { %v967_v20 = vpop.f32.mrf.mxu3  ;;  %1501 = vperm.xlu0 %1701, %v1624_v13  }
 0x2c1   :  { %v992_v60 = vadd.f32 %v988_v41, %v965_v2  ;;  %v968_v16 = vadd.f32 %v967_v20, %v923_v44  ;;  %v1623_v2 = vld [vmem:[%s2703_s4 + $0x28] sm:$0xff]  ;;  %v1622_v41 = vld [vmem:[%s2703_s4 + $0x20] sm:$0xff] }
 0x2c2   :  { %1496 = vperm.xlu1 %1700, %v1623_v2   ;;  %v1627_v44 = vld [vmem:[%s2705_s6 + $0x8] sm:$0xff]  ;;  %1491 = vperm.xlu2 %1702, %v1622_v41  }
 0x2c3   :  { %v996_v4 = vmul.f32 0.7978846, %v992_v60  ;;  %v981_v11 = vmul.f32 %v968_v16, %v968_v16  ;;  %v977_v55 = vmul.f32 0.5, %v968_v16  ;;  %v2643_v60 = vpop.permute.xlu1 %1058 }
 0x2c5   :  { %1721 = vtanh.f32 %v996_v4  ;;  %v985_v45 = vmul.f32 %v981_v11, %v968_v16  ;;  %v2641_v20 = vpop.permute.xlu2 %1107 }
 0x2c7   :  { %v989_v62 = vmul.f32 0.044715, %v985_v45 }
 0x2c8   :  { %v970_v54 = vpop.f32.mrf.mxu3 }
 0x2c9   :  { %v993_v27 = vadd.f32 %v989_v62, %v968_v16  ;;  %v971_v38 = vadd.f32 %v970_v54, %v928_v25 }
 0x2ca   :  { %1551 = vperm.xlu1 %1700, %v1627_v44  }
 0x2cb   :  { %v1722_v51 = vpop.eup %1721  ;;  %v997_v3 = vmul.f32 0.7978846, %v993_v27  ;;  %v982_v12 = vmul.f32 %v971_v38, %v971_v38  ;;  %v978_v28 = vmul.f32 0.5, %v971_v38  ;;  %v2646_v16 = vpop.permute.xlu1 %1103 }
 0x2cc   :  { %v1004_v50 = vadd.f32 1.0, %v1722_v51 }
 0x2cd   :  { %1723 = vtanh.f32 %v997_v3  ;;  %v986_v10 = vmul.f32 %v982_v12, %v971_v38  ;;  %v2648_v4 = vpop.permute.xlu2 %1160  ;;  %v1049_v3 = vpop.permute.xlu0 %1048 }
 0x2ce   :  { %v2595_v9 = vmul.f32 %v1004_v50, %v976_v63 }
 0x2cf   :  { %v990_v21 = vmul.f32 0.044715, %v986_v10 }
 0x2d0   :  { %v973_v46 = vpop.f32.mrf.mxu3  ;;  %1028 = vmatmul.f32.vlgmr.msrb.gmra.mxu0 %v2595_v9  ;;  %1081 = vmatmul.f32.vlgmr.msrb.gmra.mxu1 %v2595_v9 }
 0x2d1   :  { %v994_v23 = vadd.f32 %v990_v21, %v971_v38  ;;  %v974_v6 = vadd.f32 %v973_v46, %v933_v7  ;;  %1134 = vmatmul.f32.vlgmr.msrb.gmra.mxu2 %v2595_v9  ;;  %1187 = vmatmul.f32.vlgmr.msrb.gmra.mxu3 %v2595_v9 }
 0x2d2   :  { %1436 = vmatpush.msrb.mxu0 %v1797_v59 }
 0x2d3   :  { %v1724_v18 = vpop.eup %1723  ;;  %v998_v17 = vmul.f32 0.7978846, %v994_v23  ;;  %v983_v31 = vmul.f32 %v974_v6, %v974_v6  ;;  %v979_v34 = vmul.f32 0.5, %v974_v6  ;;  %v2651_v11 = vpop.permute.xlu1 %1156 }
 0x2d4   :  { %v1005_v43 = vadd.f32 1.0, %v1724_v18  ;;  %1437 = vmatpush.msrb.mxu0 %v1798_v48 }
 0x2d5   :  { %1725 = vtanh.f32 %v998_v17  ;;  %v987_v0 = vmul.f32 %v983_v31, %v974_v6  ;;  %v2653_v45 = vpop.permute.xlu2 %1213 }
 0x2d6   :  { %v2601_v42 = vmul.f32 %v1005_v43, %v977_v55  ;;  %1438 = vmatpush.msrb.mxu0 %v1799_v47 }
 0x2d7   :  { %v991_v8 = vmul.f32 0.044715, %v987_v0 }
 0x2d8   :  { %1031 = vmatmul.f32.gmra.mxu0 %v2601_v42  ;;  %1084 = vmatmul.f32.gmra.mxu1 %v2601_v42 }
 0x2d9   :  { %v995_v32 = vadd.f32 %v991_v8, %v974_v6  ;;  %1137 = vmatmul.f32.gmra.mxu2 %v2601_v42  ;;  %1190 = vmatmul.f32.gmra.mxu3 %v2601_v42 }
 0x2da   :  { %1439 = vmatpush.msrb.mxu0 %v1800_v19 }
 0x2db   :  { %v1726_v39 = vpop.eup %1725  ;;  %v999_v15 = vmul.f32 0.7978846, %v995_v32  ;;  %v1096_v62 = vpop.permute.xlu1 %1095 }
 0x2dc   :  { %v1006_v52 = vadd.f32 1.0, %v1726_v39  ;;  %1440 = vmatpush.msrb.mxu0 %v1801_v49 }
 0x2dd   :  { %1727 = vtanh.f32 %v999_v15  ;;  %v1153_v25 = vpop.permute.xlu2 %1152 }
 0x2de   :  { %v2607_v57 = vmul.f32 %v1006_v52, %v978_v28  ;;  %1441 = vmatpush.msrb.mxu0 %v1802_v61 }
 0x2e0   :  { %1034 = vmatmul.f32.gmra.mxu0 %v2607_v57  ;;  %1087 = vmatmul.f32.gmra.mxu1 %v2607_v57 }
 0x2e1   :  { %1140 = vmatmul.f32.gmra.mxu2 %v2607_v57  ;;  %1193 = vmatmul.f32.gmra.mxu3 %v2607_v57 }
 0x2e2   :  { %1442 = vmatpush.msrb.mxu0 %v1803_v37 }
 0x2e3   :  { %v1728_v14 = vpop.eup %1727  ;;  %v2655_v54 = vpop.permute.xlu1 %1266 }
 0x2e4   :  { %v1007_v35 = vadd.f32 1.0, %v1728_v14  ;;  %1443 = vmatpush.msrb.mxu0 %v1804_v53 }
 0x2e5   :  { %v1149_v27 = vpop.permute.xlu2 %1148 }
 0x2e6   :  { %v1011_v29 = vmul.f32 %v1007_v35, %v979_v34  ;;  %1444 = vmatpush.msrb.mxu0 %v1805_v22 }
 0x2e8   :  { %1037 = vmatmul.f32.gmra.mxu0 %v1011_v29  ;;  %1090 = vmatmul.f32.gmra.mxu1 %v1011_v29 }
 0x2e9   :  { %1143 = vmatmul.f32.gmra.mxu2 %v1011_v29  ;;  %1196 = vmatmul.f32.gmra.mxu3 %v1011_v29 }
 0x2ea   :  { %1445 = vmatpush.msrb.mxu0 %v1806_v5 }
 0x2eb   :  { %v1206_v38 = vpop.permute.xlu1 %1205 }
 0x2ec   :  { %1446 = vmatpush.msrb.mxu0 %v1807_v1 }
 0x2ed   :  { %v2657_v51 = vpop.permute.xlu2 %1262 }
 0x2ee   :  { %1447 = vmatpush.msrb.mxu0 %v1808_v24 }
 0x2f0   :  { %1240 = vmatmul.f32.vlgmr.msra.gmra.mxu0 %v2595_v9  ;;  %1293 = vmatmul.f32.vlgmr.msra.gmra.mxu1 %v2595_v9 }
 0x2f1   :  { %1346 = vmatmul.f32.vlgmr.msra.gmra.mxu2 %v2595_v9  ;;  %1399 = vmatmul.f32.vlgmr.msra.gmra.mxu3 %v2595_v9 }
 0x2f2   :  { %1448 = vmatpush.msrb.mxu0 %v1809_v26 }
 0x2f3   :  { %v1202_v12 = vpop.permute.xlu1 %1201 }
 0x2f4   :  { %1449 = vmatpush.msrb.mxu0 %v1810_v40 }
 0x2f5   :  { %v1259_v63 = vpop.permute.xlu2 %1258 }
 0x2f6   :  { %1450 = vmatpush.msrb.mxu0 %v1811_v36 }
 0x2f8   :  { %1243 = vmatmul.f32.gmra.mxu0 %v2601_v42  ;;  %1296 = vmatmul.f32.gmra.mxu1 %v2601_v42 }
 0x2f9   :  { %1349 = vmatmul.f32.gmra.mxu2 %v2601_v42  ;;  %1402 = vmatmul.f32.gmra.mxu3 %v2601_v42 }
 0x2fa   :  { %1451 = vmatpush.msrb.mxu0 %v1812_v56 }
 0x2fb   :  { %v2659_v6 = vpop.permute.xlu1 %1315 }
 0x2fd   :  { %v2661_v43 = vpop.permute.xlu2 %1372 }
 0x300   :  { %1246 = vmatmul.f32.gmra.mxu0 %v2607_v57  ;;  %1299 = vmatmul.f32.gmra.mxu1 %v2607_v57 }
 0x301   :  { %1352 = vmatmul.f32.gmra.mxu2 %v2607_v57  ;;  %1405 = vmatmul.f32.gmra.mxu3 %v2607_v57 }
 0x303   :  { %v1312_v15 = vpop.permute.xlu1 %1311 }
 0x305   :  { %v2663_v28 = vpop.permute.xlu2 %1368 }
 0x308   :  { %1249 = vmatmul.f32.gmra.mxu0 %v1011_v29  ;;  %1302 = vmatmul.f32.gmra.mxu1 %v1011_v29 }
 0x309   :  { %1355 = vmatmul.f32.gmra.mxu2 %v1011_v29  ;;  %1408 = vmatmul.f32.gmra.mxu3 %v1011_v29 }
 0x30b   :  { %v2665_v37 = vpop.permute.xlu1 %1425 }
 0x30d   :  { %v1308_v14 = vpop.permute.xlu2 %1307 }
 0x310   :  { %1452 = vmatmul.f32.vlgmr.msrb.gmra.mxu0 %v2595_v9  ;;  %v1054_v9 = vpop.permute.xlu0 %1053 }
 0x313   :  { %v2667_v5 = vpop.permute.xlu1 %1421 }
 0x315   :  { %v2669_v1 = vpop.permute.xlu2 %1478 }
 0x318   :  { %1455 = vmatmul.f32.gmra.mxu0 %v2601_v42  ;;  %v1100_v17 = vpop.permute.xlu0 %1099 }
 0x31b   :  { %v1361_v2 = vpop.permute.xlu1 %1360 }
 0x320   :  { %1458 = vmatmul.f32.gmra.mxu0 %v2607_v57  ;;  %v1210_v53 = vpop.permute.xlu0 %1209 }
 0x328   :  { %1461 = vmatmul.f32.gmra.mxu0 %v1011_v29  ;;  %v2671_v40 = vpop.permute.xlu0 %1319 }
 0x330   :  { %v1255_v41 = vpop.permute.xlu0 %1254 }
 0x34d   :  { %v1029_v50 = vpop.f32.mrf.mxu0  ;;  %v1082_v10 = vpop.f32.mrf.mxu1 }
 0x34e   :  { %v1061_v21 = vmul.f32 %v1044_v30, %v1029_v50  ;;  %v1110_v7 = vmul.f32 %v1096_v62, %v1082_v10  ;;  %v1418_v30 = vpop.permute.xlu2 %1417  ;;  %v1414_v50 = vpop.permute.xlu1 %1413 }
 0x350   :  { %v1114_v46 = vadd.f32 %v1110_v7, %v1061_v21 }
 0x354   :  { %v1135_v23 = vpop.f32.mrf.mxu2  ;;  %v1188_v42 = vpop.f32.mrf.mxu3 }
 0x355   :  { %v1163_v59 = vmul.f32 %v1149_v27, %v1135_v23  ;;  %v1032_v18 = vpop.f32.mrf.mxu0  ;;  %v1085_v31 = vpop.f32.mrf.mxu1 }
 0x356   :  { %v1062_v48 = vmul.f32 %v1049_v3, %v1032_v18  ;;  %v1111_v0 = vmul.f32 %v1100_v17, %v1085_v31  ;;  %v1471_v7 = vpop.permute.xlu2 %1470  ;;  %v1365_v31 = vpop.permute.xlu0 %1364 }
 0x357   :  { %v1167_v55 = vadd.f32 %v1163_v59, %v1114_v46  ;;  %v1216_v59 = vmul.f32 %v1202_v12, %v1188_v42 }
 0x358   :  { %v1115_v8 = vadd.f32 %v1111_v0, %v1062_v48 }
 0x35c   :  { %v1138_v47 = vpop.f32.mrf.mxu2  ;;  %v1191_v52 = vpop.f32.mrf.mxu3 }
 0x35d   :  { %v1164_v32 = vmul.f32 %v1153_v25, %v1138_v47  ;;  %v1035_v19 = vpop.f32.mrf.mxu0  ;;  %v1088_v57 = vpop.f32.mrf.mxu1  ;;  %v1217_v10 = vmul.f32 %v1206_v38, %v1191_v52 }
 0x35e   :  { %v1063_v27 = vmul.f32 %v1054_v9, %v1035_v19  ;;  %v1112_v3 = vmul.f32 %v2646_v16, %v1088_v57 }
 0x35f   :  { %v1168_v39 = vadd.f32 %v1164_v32, %v1115_v8  ;;  %v1220_v8 = vadd.f32 %v1216_v59, %v1167_v55 }
 0x360   :  { %v1116_v18 = vadd.f32 %v1112_v3, %v1063_v27 }
 0x361   :  { %v1221_v23 = vadd.f32 %v1217_v10, %v1168_v39  ;;  %v2678_v39 = vpop.permute.xlu1 %1506 }
 0x364   :  { %v1141_v61 = vpop.f32.mrf.mxu2  ;;  %v1194_v35 = vpop.f32.mrf.mxu3 }
 0x365   :  { %v1038_v49 = vpop.f32.mrf.mxu0  ;;  %v1091_v29 = vpop.f32.mrf.mxu1  ;;  %v1165_v46 = vmul.f32 %v2651_v11, %v1141_v61 }
 0x366   :  { %v1064_v9 = vmul.f32 %v2643_v60, %v1038_v49  ;;  %v1113_v16 = vmul.f32 %v2641_v20, %v1091_v29  ;;  %v1467_v49 = vpop.permute.xlu2 %1466 }
 0x367   :  { %v1169_v32 = vadd.f32 %v1165_v46, %v1116_v18 }
 0x36c   :  { %v1144_v22 = vpop.f32.mrf.mxu2  ;;  %v1197_v26 = vpop.f32.mrf.mxu3 }
 0x36d   :  { %v1241_v34 = vpop.f32.mrf.mxu0  ;;  %v1294_v36 = vpop.f32.mrf.mxu1  ;;  %v1166_v12 = vmul.f32 %v2648_v4, %v1144_v22 }
 0x36e   :  { %v1269_v17 = vmul.f32 %v1255_v41, %v1241_v34  ;;  %v1322_v55 = vmul.f32 %v1308_v14, %v1294_v36  ;;  %v1117_v41 = vadd.f32 %v1113_v16, %v1064_v9 }
 0x370   :  { %v1273_v52 = vadd.f32 %v1269_v17, %v1220_v8  ;;  %v1170_v29 = vadd.f32 %v1166_v12, %v1117_v41  ;;  %v1492_v17 = vpop.permute.xlu2 %1491 }
 0x372   :  { %v1326_v20 = vadd.f32 %v1322_v55, %v1273_v52 }
 0x374   :  { %v1347_v58 = vpop.f32.mrf.mxu2  ;;  %v1400_v13 = vpop.f32.mrf.mxu3 }
 0x375   :  { %v1244_v24 = vpop.f32.mrf.mxu0  ;;  %v1297_v62 = vpop.f32.mrf.mxu1  ;;  %v1428_v36 = vmul.f32 %v1414_v50, %v1400_v13 }
 0x376   :  { %v1270_v21 = vmul.f32 %v1259_v63, %v1244_v24  ;;  %v1323_v19 = vmul.f32 %v1312_v15, %v1297_v62  ;;  %v1218_v63 = vmul.f32 %v1210_v53, %v1194_v35  ;;  %v1375_v24 = vmul.f32 %v1361_v2, %v1347_v58  ;;  %v1475_v62 = vpop.permute.xlu0 %1474 }
 0x378   :  { %v1274_v48 = vadd.f32 %v1270_v21, %v1221_v23  ;;  %v1222_v34 = vadd.f32 %v1218_v63, %v1169_v32  ;;  %v1497_v23 = vpop.permute.xlu1 %1496 }
 0x37a   :  { %v1327_v42 = vadd.f32 %v1323_v19, %v1274_v48 }
 0x37c   :  { %v1350_v25 = vpop.f32.mrf.mxu2  ;;  %v1403_v0 = vpop.f32.mrf.mxu3 }
 0x37d   :  { %v1247_v56 = vpop.f32.mrf.mxu0  ;;  %v1376_v38 = vmul.f32 %v1365_v31, %v1350_v25  ;;  %v1300_v57 = vpop.f32.mrf.mxu1  ;;  %v1429_v35 = vmul.f32 %v1418_v30, %v1403_v0  ;;  %v1219_v25 = vmul.f32 %v2653_v45, %v1197_v26 }
 0x37e   :  { %v1271_v11 = vmul.f32 %v2657_v51, %v1247_v56  ;;  %v1379_v51 = vadd.f32 %v1375_v24, %v1326_v20  ;;  %v1324_v56 = vmul.f32 %v2659_v6, %v1300_v57  ;;  %v1502_v50 = vpop.permute.xlu0 %1501 }
 0x37f   :  { %v1380_v60 = vadd.f32 %v1376_v38, %v1327_v42  ;;  %v1223_v21 = vadd.f32 %v1219_v25, %v1170_v29 }
 0x380   :  { %v1275_v15 = vadd.f32 %v1271_v11, %v1222_v34  ;;  %v1432_v30 = vadd.f32 %v1428_v36, %v1379_v51 }
 0x381   :  { %v1433_v27 = vadd.f32 %v1429_v35, %v1380_v60 }
 0x382   :  { %v1328_v58 = vadd.f32 %v1324_v56, %v1275_v15 }
 0x384   :  { %v1353_v61 = vpop.f32.mrf.mxu2  ;;  %v1406_v14 = vpop.f32.mrf.mxu3 }
 0x385   :  { %v1250_v44 = vpop.f32.mrf.mxu0  ;;  %v1377_v4 = vmul.f32 %v2663_v28, %v1353_v61  ;;  %v1303_v59 = vpop.f32.mrf.mxu1  ;;  %v1430_v6 = vmul.f32 %v2667_v5, %v1406_v14 }
 0x386   :  { %v1272_v2 = vmul.f32 %v2655_v54, %v1250_v44  ;;  %v1325_v13 = vmul.f32 %v2671_v40, %v1303_v59 }
 0x387   :  { %v1381_v46 = vadd.f32 %v1377_v4, %v1328_v58 }
 0x388   :  { %v1276_v28 = vadd.f32 %v1272_v2, %v1223_v21 }
 0x389   :  { %v1434_v31 = vadd.f32 %v1430_v6, %v1381_v46  ;;  %v1626_v46 = vld [vmem:[%s2704_s5 + $0x8] sm:$0xff]  ;;  %s1595_s5 = sshll.u32 %s2707_s8, 4  ;;  %s1596_s5 = int_to_ptr.hbm [resolvable:$true] %s1595_s5 }
 0x38a   :  { %v1329_v48 = vadd.f32 %v1325_v13, %v1276_v28 }
 0x38c   :  { %v1356_v18 = vpop.f32.mrf.mxu2  ;;  %v1409_v8 = vpop.f32.mrf.mxu3 }
 0x38d   :  { %v1453_v47 = vpop.f32.mrf.mxu0  ;;  %v1378_v54 = vmul.f32 %v2661_v43, %v1356_v18  ;;  %v1431_v5 = vmul.f32 %v2665_v37, %v1409_v8 }
 0x38e   :  { %v1481_v3 = vmul.f32 %v1467_v49, %v1453_v47 }
 0x38f   :  { %v1382_v9 = vadd.f32 %v1378_v54, %v1329_v48 }
 0x391   :  { %v1435_v11 = vadd.f32 %v1431_v5, %v1382_v9 }
 0x395   :  { %v1456_v53 = vpop.f32.mrf.mxu0 }
 0x396   :  { %v1482_v22 = vmul.f32 %v1471_v7, %v1456_v53  ;;  %v1485_v7 = vadd.f32 %v1481_v3, %v1432_v30 }
 0x398   :  { %v1486_v10 = vadd.f32 %v1482_v22, %v1433_v27  ;;  %v1509_v0 = vadd.f32 %v1492_v17, %v1485_v7 }
 0x39a   :  { %v1510_v45 = vadd.f32 %v1497_v23, %v1486_v10  ;;  %v1517_v19 = vmul.f32 %v1509_v0, %v1509_v0  ;;  %v1513_v21 = vmul.f32 0.5, %v1509_v0  ;;  %v1552_v23 = vpop.permute.xlu1 %1551 }
 0x39c   :  { %v1518_v32 = vmul.f32 %v1510_v45, %v1510_v45  ;;  %v1521_v43 = vmul.f32 %v1517_v19, %v1509_v0  ;;  %v1514_v2 = vmul.f32 0.5, %v1510_v45 }
 0x39d   :  { %v1459_v26 = vpop.f32.mrf.mxu0 }
 0x39e   :  { %v1483_v44 = vmul.f32 %v1475_v62, %v1459_v26  ;;  %v1522_v63 = vmul.f32 %v1518_v32, %v1510_v45  ;;  %v1525_v55 = vmul.f32 0.044715, %v1521_v43 }
 0x3a0   :  { %v1487_v47 = vadd.f32 %v1483_v44, %v1434_v31  ;;  %v1526_v61 = vmul.f32 0.044715, %v1522_v63  ;;  %v1529_v37 = vadd.f32 %v1525_v55, %v1509_v0 }
 0x3a2   :  { %v1511_v16 = vadd.f32 %v1502_v50, %v1487_v47  ;;  %v1530_v60 = vadd.f32 %v1526_v61, %v1510_v45  ;;  %v1533_v62 = vmul.f32 0.7978846, %v1529_v37 }
 0x3a4   :  { %v1519_v38 = vmul.f32 %v1511_v16, %v1511_v16  ;;  %v1534_v29 = vmul.f32 0.7978846, %v1530_v60  ;;  %v1515_v14 = vmul.f32 0.5, %v1511_v16 }
 0x3a5   :  { %v1462_v52 = vpop.f32.mrf.mxu0 }
 0x3a6   :  { %v1523_v12 = vmul.f32 %v1519_v38, %v1511_v16  ;;  %v1484_v40 = vmul.f32 %v2669_v1, %v1462_v52 }
 0x3a8   :  { %v1527_v42 = vmul.f32 0.044715, %v1523_v12  ;;  %v1488_v57 = vadd.f32 %v1484_v40, %v1435_v11 }
 0x3aa   :  { %v1512_v34 = vadd.f32 %v2678_v39, %v1488_v57  ;;  %v1531_v24 = vadd.f32 %v1527_v42, %v1511_v16 }
 0x3ac   :  { %v1520_v41 = vmul.f32 %v1512_v34, %v1512_v34  ;;  %v1535_v15 = vmul.f32 0.7978846, %v1531_v24  ;;  %v1516_v39 = vmul.f32 0.5, %v1512_v34 }
 0x3ae   :  { %v1524_v49 = vmul.f32 %v1520_v41, %v1512_v34  ;;  %1729 = vtanh.f32 %v1535_v15 }
 0x3af   :  { %1731 = vtanh.f32 %v1534_v29 }
 0x3b0   :  { %v1528_v20 = vmul.f32 0.044715, %v1524_v49 }
 0x3b2   :  { %v1532_v35 = vadd.f32 %v1528_v20, %v1512_v34 }
 0x3b4   :  { %v1536_v53 = vmul.f32 0.7978846, %v1532_v35  ;;  %v1730_v1 = vpop.eup %1729 }
 0x3b5   :  { %v1732_v51 = vpop.eup %1731  ;;  %v1543_v22 = vadd.f32 1.0, %v1730_v1 }
 0x3b6   :  { %1733 = vtanh.f32 %v1536_v53  ;;  %v1542_v36 = vadd.f32 1.0, %v1732_v51 }
 0x3b7   :  { %1735 = vtanh.f32 %v1533_v62  ;;  %v1547_v58 = vmul.f32 %v1543_v22, %v1515_v14 }
 0x3b8   :  { %v1546_v10 = vmul.f32 %v1542_v36, %v1514_v2 }
 0x3bc   :  { %v1734_v56 = vpop.eup %1733 }
 0x3bd   :  { %v1544_v4 = vadd.f32 1.0, %v1734_v56  ;;  %v1736_v25 = vpop.eup %1735 }
 0x3be   :  { %v1541_v3 = vadd.f32 1.0, %v1736_v25 }
 0x3bf   :  { %v1548_v27 = vmul.f32 %v1544_v4, %v1516_v39 }
 0x3c0   :  { %v1545_v30 = vmul.f32 %v1541_v3, %v1513_v21 }
 0x3c1   :  { %1569 = vmatpush.msrb.mxu1 %v1548_v27 }
 0x3c3   :  { %1570 = vmatpush.msrb.mxu1 %v1547_v58 }
 0x3c5   :  { %1571 = vmatpush.msrb.mxu1 %v1546_v10 }
 0x3c7   :  { %1572 = vmatpush.msrb.mxu1 %v1545_v30 }
 0x3c8   :  { %1632 = vmatmul.msk.f32.vlgmr.msrb.gmra.mxu1 %vm857_vm1, %v1626_v46 }
 0x445   :  { %v1574_v59 = vpop.f32.mrf.mxu1 }
 0x446   :  { %v1575_v18 = vadd.f32 %v1574_v59, %v1552_v23 }
 0x448   :  { %v1577_v6 = vadd.f32 %v1575_v18, %v2533_v33 }
 0x44a   :  { %v1579_v28 = vmul.f32 %v1577_v6, %v1577_v6  ;;  %v1578_v13 = vmul.f32 0.5, %v1577_v6 }
 0x44c   :  { %v1580_v7 = vmul.f32 %v1579_v28, %v1577_v6 }
 0x44e   :  { %v1581_v17 = vmul.f32 0.044715, %v1580_v7 }
 0x450   :  { %v1582_v45 = vadd.f32 %v1581_v17, %v1577_v6 }
 0x452   :  { %v1583_v26 = vmul.f32 0.7978846, %v1582_v45 }
 0x454   :  { %1737 = vtanh.f32 %v1583_v26 }
 0x45a   :  { %v1738_v31 = vpop.eup %1737 }
 0x45b   :  { %v1585_v54 = vadd.f32 1.0, %v1738_v31 }
 0x45d   :  { %v1586_v44 = vmul.f32 %v1585_v54, %v1578_v13 }
 0x45f   :  { %1587 = vst [vmem:[#allocation5] sm:$0xff] %v1586_v44 }
 0x460   :  { %1598 = dma.vmem_to_hbm [thread:$0]  %s1594_s7, 128, %s1596_s5, [#allocation4]  }
 0x461   :  { %1863 = dma.done.wait [#allocation4], 128  }
 0x462   :  { %1864 = vsyncadd [#allocation4], 4294967168 }
 0x463   :  { %1603 = vsyncpa [#allocation3], 1 }
 0x464   :  { %1604 = vsyncpa [#allocation4], 1 }

</bundles_post_ra>
